<compile_context>
chip_gen: v6e
topology: v6e:2x2x1
jax: 0.10.0
libtpu: 0.0.40
codegen_flags: <defaults>
</compile_context>

<pallas_src>
import functools

import jax
import jax.numpy as jnp
from jax.experimental import pallas as pl
from jax.experimental.pallas import tpu as pltpu

_LANE = 128


def _round_up(x, m):
    return ((x + m - 1) // m) * m


def _chip_kind():
    try:
        return jax.devices()[0].device_kind.lower()
    except Exception:
        return ""


def _cores_per_chip(kind):
    # v7x has 2 TensorCores per chip; v5e/v6e (and older) have 1.
    return 2 if "v7" in kind else 1


def _default_hidden_dtype(kind):
    # v6e/v7x VPUs have native bf16; keep the hidden epilogue in f32 elsewhere.
    return jnp.bfloat16 if ("v6" in kind or "v7" in kind) else jnp.float32


def _pad2(a, rows, cols):
    if a.shape == (rows, cols):
        return a
    return jnp.zeros((rows, cols), a.dtype).at[: a.shape[0], : a.shape[1]].set(a)


def _autoencoder_kernel(
    x_ref,
    w1_ref, b1_ref,
    w2_ref, b2_ref,
    w3_ref, b3_ref,
    w4_ref, b4_ref,
    w5_ref, b5_ref,
    w6_ref, b6_ref,
    out_ref,
):
    """Fused 6-layer MLP.  All hidden widths pre-padded to 128 (lane-dense)."""

    def hidden(h, w_ref, b_ref):
        # bf16 x bf16 operands on the MXU, f32 accumulation.  Epilogue (bias add
        # + ReLU) runs in b_ref.dtype: bf16 on v6e/v7x, f32 on v5e.
        y = jnp.dot(h, w_ref[...], preferred_element_type=jnp.float32)
        y = y.astype(b_ref.dtype) + b_ref[...]
        return jnp.maximum(y, 0.0).astype(jnp.bfloat16)

    h = x_ref[...]                                   # bf16 (bt, D_pad)
    # Encoder
    h = hidden(h, w1_ref, b1_ref)                    # (bt, 128)
    h = hidden(h, w2_ref, b2_ref)                    # (bt, 128)  [64 real]
    h = hidden(h, w3_ref, b3_ref)                    # (bt, 128)  [enc real]
    # Decoder
    h = hidden(h, w4_ref, b4_ref)                    # (bt, 128)  [64 real]
    h = hidden(h, w5_ref, b5_ref)                    # (bt, 128)
    y = jnp.dot(h, w6_ref[...], preferred_element_type=jnp.float32) + b6_ref[...]
    out_ref[...] = jax.nn.sigmoid(y).astype(out_ref.dtype)       # (bt, D_pad)


def autoencoder_forward(x, params, *, batch_tile=512, hidden_dtype=None, out_dtype=None):
    """Run the fused autoencoder kernel.

    x: (B, input_dim) float32
    params: dict with w1..w6 stored as (in, out) and b1..b6 as (1, out), f32.
    """
    B, D = x.shape
    D_pad = _round_up(D, _LANE)          # lane-dense stores (unmasked vst)

    kind = _chip_kind()
    cores = _cores_per_chip(kind)
    if hidden_dtype is None:
        hidden_dtype = _default_hidden_dtype(kind)
    if out_dtype is None:
        out_dtype = x.dtype              # pass jnp.bfloat16 to halve writeback bytes
    out_itemsize = jnp.dtype(out_dtype).itemsize

    # ---- batch tile: as large as the batch allows (multiple of 8) ------------
    B8 = _round_up(B, 8)
    bt = max(8, min(_round_up(batch_tile, 8), B8))
    # Only split the grid on multi-TensorCore chips (v7x); on v5e/v6e a split
    # is a serial loop and just adds per-step overhead.
    if cores >= 2 and pl.cdiv(B8, bt) < 2 and B8 >= 16:
        bt = _round_up(pl.cdiv(B, 2), 8)
    B_pad = _round_up(B, bt)
    grid = (B_pad // bt,)

    # ---- input: bf16 + padding (first matmul downcasts anyway -> exact) ------
    xp = x.astype(jnp.bfloat16)
    if (B_pad, D_pad) != (B, D):
        xp = jnp.zeros((B_pad, D_pad), jnp.bfloat16).at[:B, :D].set(xp)

    # ---- weights: pad every hidden width to 128, cast to bf16 ----------------
    H = _LANE
    pad_dims = [(D_pad, H), (H, H), (H, H), (H, H), (H, H), (H, D_pad)]
    ws, bs = [], []
    for k, (rows, cols) in enumerate(pad_dims, start=1):
        ws.append(_pad2(params[f"w{k}"], rows, cols).astype(jnp.bfloat16))
        bdt = jnp.float32 if k == 6 else hidden_dtype
        bs.append(_pad2(params[f"b{k}"], 1, cols).astype(bdt))

    weight_args = []
    in_specs = [pl.BlockSpec((bt, D_pad), lambda i: (i, 0))]
    for w, b in zip(ws, bs):
        weight_args.extend([w, b])
        # Constant-index blocks are fetched once and stay resident; Buffered(1)
        # drops the unused second pipeline buffer (halves resident-weight VMEM).
        in_specs.append(
            pl.BlockSpec(w.shape, lambda i: (0, 0), pipeline_mode=pl.Buffered(1)))
        in_specs.append(
            pl.BlockSpec(b.shape, lambda i: (0, 0), pipeline_mode=pl.Buffered(1)))

    out_spec = pl.BlockSpec((bt, D_pad), lambda i: (i, 0))

    # ---- cost estimate + VMEM budget ------------------------------------------
    flops = 2 * B_pad * sum(m * n for m, n in pad_dims)
    param_bytes = sum(int(a.size) * a.dtype.itemsize for a in weight_args)
    io_bytes = int(xp.size) * 2 + B_pad * D_pad * out_itemsize
    cost = pl.CostEstimate(
        flops=flops,
        transcendentals=B_pad * D_pad,          # sigmoid on the output tile
        bytes_accessed=param_bytes + io_bytes,
    )

    vmem_need = (
        2 * bt * D_pad * 2                      # x tile, double-buffered, bf16
        + 2 * bt * D_pad * out_itemsize         # out tile, double-buffered
        + param_bytes                           # weights/biases, single-buffered
        + 6 * bt * H * 4                        # activation slack
    )
    vmem_limit = None
    if vmem_need > 16 * 1024 * 1024:
        # Cap well below v7x's 64 MiB physical VMEM per TC to leave headroom
        # for compiler scratch; shrink batch_tile instead of raising further.
        vmem_limit = min(int(vmem_need * 3) // 2, 48 * 1024 * 1024)

    out_pad = pl.pallas_call(
        _autoencoder_kernel,
        out_shape=jax.ShapeDtypeStruct((B_pad, D_pad), out_dtype),
        grid_spec=pltpu.PrefetchScalarGridSpec(
            num_scalar_prefetch=0,
            grid=grid,
            in_specs=in_specs,
            out_specs=out_spec,
        ),
        compiler_params=pltpu.CompilerParams(
            # TODO(synk): if "parallel" does not shard the batch axis across
            #             v7x's 2 TCs in a given toolchain, switch to
            #             pltpu.CORE_PARALLEL on this axis.
            dimension_semantics=("parallel",),
            vmem_limit_bytes=vmem_limit,
        ),
        cost_estimate=cost,
    )(xp, *weight_args)

    # Padded rows/cols (sigmoid(0)=0.5) are always sliced off here.
    return out_pad[:B, :D]


def init_params(key, input_dim, encoding_dim=32):
    """Deterministic PyTorch-style (Kaiming-uniform) init of Linear params."""
    dims = [
        (input_dim, 128),
        (128, 64),
        (64, encoding_dim),
        (encoding_dim, 64),
        (64, 128),
        (128, input_dim),
    ]
    params = {}
    for idx, (fan_in, fan_out) in enumerate(dims, start=1):
        key, kw, kb = jax.random.split(key, 3)
        bound = 1.0 / jnp.sqrt(jnp.float32(fan_in))
        # stored as (in, out) so the kernel does x @ W
        params[f"w{idx}"] = jax.random.uniform(
            kw, (fan_in, fan_out), jnp.float32, -bound, bound
        )
        params[f"b{idx}"] = jax.random.uniform(
            kb, (1, fan_out), jnp.float32, -bound, bound
        )
    return params


def _reference_forward(x, params, hidden_dtype=jnp.float32):
    """Plain-JAX reference mirroring the kernel's bf16-operand / f32-accum math."""
    h = x.astype(jnp.bfloat16)
    for k in range(1, 7):
        w = params[f"w{k}"].astype(jnp.bfloat16)
        b = params[f"b{k}"]
        y = jnp.dot(h, w, preferred_element_type=jnp.float32)
        if k < 6:
            y = y.astype(hidden_dtype) + b.astype(hidden_dtype)
            h = jnp.maximum(y, 0.0).astype(jnp.bfloat16)
        else:
            h = jax.nn.sigmoid(y + b.astype(jnp.float32))
    return h.astype(jnp.float32)


if __name__ == "__main__":
    key = jax.random.PRNGKey(0)
    batch, input_dim, encoding_dim = 256, 64, 32

    k_params, k_x = jax.random.split(key)
    params = init_params(k_params, input_dim, encoding_dim)
    x = jax.random.uniform(k_x, (batch, input_dim), jnp.float32)

    hd = _default_hidden_dtype(_chip_kind())
    fwd = jax.jit(
        functools.partial(autoencoder_forward, batch_tile=512, hidden_dtype=hd)
    )
    out = fwd(x, params)
    jax.block_until_ready(out)

    ref = _reference_forward(x, params, hidden_dtype=hd)
    assert out.shape == (batch, input_dim)
    max_err = float(jnp.max(jnp.abs(out - ref)))
    assert jnp.allclose(out, ref, atol=1e-2, rtol=1e-2), f"mismatch vs reference: {max_err}"

    print("KERNEL_OK")
</pallas_src>

<mosaic_0001>
module attributes {stable_mosaic.version = 11 : i64} {
  func.func @_autoencoder_kernel(%arg0: i32, %arg1: memref<256x128xbf16, #tpu.memory_space<vmem>>, %arg2: memref<128x128xbf16, #tpu.memory_space<vmem>>, %arg3: memref<1x128xf32, #tpu.memory_space<vmem>>, %arg4: memref<128x128xbf16, #tpu.memory_space<vmem>>, %arg5: memref<1x128xf32, #tpu.memory_space<vmem>>, %arg6: memref<128x128xbf16, #tpu.memory_space<vmem>>, %arg7: memref<1x128xf32, #tpu.memory_space<vmem>>, %arg8: memref<128x128xbf16, #tpu.memory_space<vmem>>, %arg9: memref<1x128xf32, #tpu.memory_space<vmem>>, %arg10: memref<128x128xbf16, #tpu.memory_space<vmem>>, %arg11: memref<1x128xf32, #tpu.memory_space<vmem>>, %arg12: memref<128x128xbf16, #tpu.memory_space<vmem>>, %arg13: memref<1x128xf32, #tpu.memory_space<vmem>>, %arg14: memref<256x128xf32, #tpu.memory_space<vmem>>) attributes {dimension_semantics = [#tpu.dimension_semantics<parallel>], iteration_bounds = array<i64: 1>, scalar_prefetch = 0 : i64, scratch_operands = 0 : i64, tpu.core_type = #tpu.core_type<tc>, window_params = [{transform_indices = @transform_0, window_bounds = array<i64: 256, 128>}, {pipeline_mode = #tpu.pipeline_mode<synchronous>, transform_indices = @transform_1, window_bounds = array<i64: 128, 128>}, {pipeline_mode = #tpu.pipeline_mode<synchronous>, transform_indices = @transform_2, window_bounds = array<i64: 1, 128>}, {pipeline_mode = #tpu.pipeline_mode<synchronous>, transform_indices = @transform_3, window_bounds = array<i64: 128, 128>}, {pipeline_mode = #tpu.pipeline_mode<synchronous>, transform_indices = @transform_4, window_bounds = array<i64: 1, 128>}, {pipeline_mode = #tpu.pipeline_mode<synchronous>, transform_indices = @transform_5, window_bounds = array<i64: 128, 128>}, {pipeline_mode = #tpu.pipeline_mode<synchronous>, transform_indices = @transform_6, window_bounds = array<i64: 1, 128>}, {pipeline_mode = #tpu.pipeline_mode<synchronous>, transform_indices = @transform_7, window_bounds = array<i64: 128, 128>}, {pipeline_mode = #tpu.pipeline_mode<synchronous>, transform_indices = @transform_8, window_bounds = array<i64: 1, 128>}, {pipeline_mode = #tpu.pipeline_mode<synchronous>, transform_indices = @transform_9, window_bounds = array<i64: 128, 128>}, {pipeline_mode = #tpu.pipeline_mode<synchronous>, transform_indices = @transform_10, window_bounds = array<i64: 1, 128>}, {pipeline_mode = #tpu.pipeline_mode<synchronous>, transform_indices = @transform_11, window_bounds = array<i64: 128, 128>}, {pipeline_mode = #tpu.pipeline_mode<synchronous>, transform_indices = @transform_12, window_bounds = array<i64: 1, 128>}, {transform_indices = @transform_13, window_bounds = array<i64: 256, 128>}]} {
    %c0 = arith.constant 0 : index
    %c0_0 = arith.constant 0 : index
    %0 = vector.load %arg1[%c0, %c0_0] : memref<256x128xbf16, #tpu.memory_space<vmem>>, vector<256x128xbf16>
    %c0_1 = arith.constant 0 : index
    %c0_2 = arith.constant 0 : index
    %1 = vector.load %arg2[%c0_1, %c0_2] : memref<128x128xbf16, #tpu.memory_space<vmem>>, vector<128x128xbf16>
    %cst = arith.constant dense<0.000000e+00> : vector<256x128xf32>
    %2 = tpu.matmul %0, %1, %cst {dimension_numbers = #tpu.dot_dimension_numbers<[1], [0], [0], [1], [0, 0, 1, 1], [], []>} : vector<256x128xbf16>, vector<128x128xbf16>, vector<256x128xf32> -> vector<256x128xf32>
    %c0_3 = arith.constant 0 : index
    %c0_4 = arith.constant 0 : index
    %3 = vector.load %arg3[%c0_3, %c0_4] : memref<1x128xf32, #tpu.memory_space<vmem>>, vector<1x128xf32>
    %4 = vector.broadcast %3 : vector<1x128xf32> to vector<256x128xf32>
    %5 = arith.addf %2, %4 : vector<256x128xf32>
    %cst_5 = arith.constant 0.000000e+00 : f32
    %6 = vector.broadcast %cst_5 : f32 to vector<256x128xf32>
    %7 = arith.maximumf %5, %6 : vector<256x128xf32>
    %8 = arith.truncf %7 : vector<256x128xf32> to vector<256x128xbf16>
    %c0_6 = arith.constant 0 : index
    %c0_7 = arith.constant 0 : index
    %9 = vector.load %arg4[%c0_6, %c0_7] : memref<128x128xbf16, #tpu.memory_space<vmem>>, vector<128x128xbf16>
    %cst_8 = arith.constant dense<0.000000e+00> : vector<256x128xf32>
    %10 = tpu.matmul %8, %9, %cst_8 {dimension_numbers = #tpu.dot_dimension_numbers<[1], [0], [0], [1], [0, 0, 1, 1], [], []>} : vector<256x128xbf16>, vector<128x128xbf16>, vector<256x128xf32> -> vector<256x128xf32>
    %c0_9 = arith.constant 0 : index
    %c0_10 = arith.constant 0 : index
    %11 = vector.load %arg5[%c0_9, %c0_10] : memref<1x128xf32, #tpu.memory_space<vmem>>, vector<1x128xf32>
    %12 = vector.broadcast %11 : vector<1x128xf32> to vector<256x128xf32>
    %13 = arith.addf %10, %12 : vector<256x128xf32>
    %cst_11 = arith.constant 0.000000e+00 : f32
    %14 = vector.broadcast %cst_11 : f32 to vector<256x128xf32>
    %15 = arith.maximumf %13, %14 : vector<256x128xf32>
    %16 = arith.truncf %15 : vector<256x128xf32> to vector<256x128xbf16>
    %c0_12 = arith.constant 0 : index
    %c0_13 = arith.constant 0 : index
    %17 = vector.load %arg6[%c0_12, %c0_13] : memref<128x128xbf16, #tpu.memory_space<vmem>>, vector<128x128xbf16>
    %cst_14 = arith.constant dense<0.000000e+00> : vector<256x128xf32>
    %18 = tpu.matmul %16, %17, %cst_14 {dimension_numbers = #tpu.dot_dimension_numbers<[1], [0], [0], [1], [0, 0, 1, 1], [], []>} : vector<256x128xbf16>, vector<128x128xbf16>, vector<256x128xf32> -> vector<256x128xf32>
    %c0_15 = arith.constant 0 : index
    %c0_16 = arith.constant 0 : index
    %19 = vector.load %arg7[%c0_15, %c0_16] : memref<1x128xf32, #tpu.memory_space<vmem>>, vector<1x128xf32>
    %20 = vector.broadcast %19 : vector<1x128xf32> to vector<256x128xf32>
    %21 = arith.addf %18, %20 : vector<256x128xf32>
    %cst_17 = arith.constant 0.000000e+00 : f32
    %22 = vector.broadcast %cst_17 : f32 to vector<256x128xf32>
    %23 = arith.maximumf %21, %22 : vector<256x128xf32>
    %24 = arith.truncf %23 : vector<256x128xf32> to vector<256x128xbf16>
    %c0_18 = arith.constant 0 : index
    %c0_19 = arith.constant 0 : index
    %25 = vector.load %arg8[%c0_18, %c0_19] : memref<128x128xbf16, #tpu.memory_space<vmem>>, vector<128x128xbf16>
    %cst_20 = arith.constant dense<0.000000e+00> : vector<256x128xf32>
    %26 = tpu.matmul %24, %25, %cst_20 {dimension_numbers = #tpu.dot_dimension_numbers<[1], [0], [0], [1], [0, 0, 1, 1], [], []>} : vector<256x128xbf16>, vector<128x128xbf16>, vector<256x128xf32> -> vector<256x128xf32>
    %c0_21 = arith.constant 0 : index
    %c0_22 = arith.constant 0 : index
    %27 = vector.load %arg9[%c0_21, %c0_22] : memref<1x128xf32, #tpu.memory_space<vmem>>, vector<1x128xf32>
    %28 = vector.broadcast %27 : vector<1x128xf32> to vector<256x128xf32>
    %29 = arith.addf %26, %28 : vector<256x128xf32>
    %cst_23 = arith.constant 0.000000e+00 : f32
    %30 = vector.broadcast %cst_23 : f32 to vector<256x128xf32>
    %31 = arith.maximumf %29, %30 : vector<256x128xf32>
    %32 = arith.truncf %31 : vector<256x128xf32> to vector<256x128xbf16>
    %c0_24 = arith.constant 0 : index
    %c0_25 = arith.constant 0 : index
    %33 = vector.load %arg10[%c0_24, %c0_25] : memref<128x128xbf16, #tpu.memory_space<vmem>>, vector<128x128xbf16>
    %cst_26 = arith.constant dense<0.000000e+00> : vector<256x128xf32>
    %34 = tpu.matmul %32, %33, %cst_26 {dimension_numbers = #tpu.dot_dimension_numbers<[1], [0], [0], [1], [0, 0, 1, 1], [], []>} : vector<256x128xbf16>, vector<128x128xbf16>, vector<256x128xf32> -> vector<256x128xf32>
    %c0_27 = arith.constant 0 : index
    %c0_28 = arith.constant 0 : index
    %35 = vector.load %arg11[%c0_27, %c0_28] : memref<1x128xf32, #tpu.memory_space<vmem>>, vector<1x128xf32>
    %36 = vector.broadcast %35 : vector<1x128xf32> to vector<256x128xf32>
    %37 = arith.addf %34, %36 : vector<256x128xf32>
    %cst_29 = arith.constant 0.000000e+00 : f32
    %38 = vector.broadcast %cst_29 : f32 to vector<256x128xf32>
    %39 = arith.maximumf %37, %38 : vector<256x128xf32>
    %40 = arith.truncf %39 : vector<256x128xf32> to vector<256x128xbf16>
    %c0_30 = arith.constant 0 : index
    %c0_31 = arith.constant 0 : index
    %41 = vector.load %arg12[%c0_30, %c0_31] : memref<128x128xbf16, #tpu.memory_space<vmem>>, vector<128x128xbf16>
    %cst_32 = arith.constant dense<0.000000e+00> : vector<256x128xf32>
    %42 = tpu.matmul %40, %41, %cst_32 {dimension_numbers = #tpu.dot_dimension_numbers<[1], [0], [0], [1], [0, 0, 1, 1], [], []>} : vector<256x128xbf16>, vector<128x128xbf16>, vector<256x128xf32> -> vector<256x128xf32>
    %c0_33 = arith.constant 0 : index
    %c0_34 = arith.constant 0 : index
    %43 = vector.load %arg13[%c0_33, %c0_34] : memref<1x128xf32, #tpu.memory_space<vmem>>, vector<1x128xf32>
    %44 = vector.broadcast %43 : vector<1x128xf32> to vector<256x128xf32>
    %45 = arith.addf %42, %44 : vector<256x128xf32>
    %46 = arith.negf %45 : vector<256x128xf32>
    %47 = math.exp %46 : vector<256x128xf32>
    %cst_35 = arith.constant 1.000000e+00 : f32
    %48 = vector.broadcast %cst_35 : f32 to vector<256x128xf32>
    %49 = arith.addf %48, %47 : vector<256x128xf32>
    %50 = arith.divf %48, %49 : vector<256x128xf32>
    %c0_36 = arith.constant 0 : index
    %c0_37 = arith.constant 0 : index
    %51 = vector.load %arg14[%c0_36, %c0_37] : memref<256x128xf32, #tpu.memory_space<vmem>>, vector<256x128xf32>
    tpu.vector_store %arg14[%c0_36, %c0_37], %50 {strides = array<i32>} : memref<256x128xf32, #tpu.memory_space<vmem>>, vector<256x128xf32>,
    return
  }
  func.func @transform_0(%arg0: i32) -> (i32, i32) {
    %c0_i32 = arith.constant 0 : i32
    %c0_i32_0 = arith.constant 0 : i32
    return %arg0, %c0_i32 : i32, i32
  }
  func.func @transform_1(%arg0: i32) -> (i32, i32) {
    %c0_i32 = arith.constant 0 : i32
    %c0_i32_0 = arith.constant 0 : i32
    %c0_i32_1 = arith.constant 0 : i32
    return %c0_i32, %c0_i32_0 : i32, i32
  }
  func.func @transform_2(%arg0: i32) -> (i32, i32) {
    %c0_i32 = arith.constant 0 : i32
    %c0_i32_0 = arith.constant 0 : i32
    %c0_i32_1 = arith.constant 0 : i32
    return %c0_i32, %c0_i32_0 : i32, i32
  }
  func.func @transform_3(%arg0: i32) -> (i32, i32) {
    %c0_i32 = arith.constant 0 : i32
    %c0_i32_0 = arith.constant 0 : i32
    %c0_i32_1 = arith.constant 0 : i32
    return %c0_i32, %c0_i32_0 : i32, i32
  }
  func.func @transform_4(%arg0: i32) -> (i32, i32) {
    %c0_i32 = arith.constant 0 : i32
    %c0_i32_0 = arith.constant 0 : i32
    %c0_i32_1 = arith.constant 0 : i32
    return %c0_i32, %c0_i32_0 : i32, i32
  }
  func.func @transform_5(%arg0: i32) -> (i32, i32) {
    %c0_i32 = arith.constant 0 : i32
    %c0_i32_0 = arith.constant 0 : i32
    %c0_i32_1 = arith.constant 0 : i32
    return %c0_i32, %c0_i32_0 : i32, i32
  }
  func.func @transform_6(%arg0: i32) -> (i32, i32) {
    %c0_i32 = arith.constant 0 : i32
    %c0_i32_0 = arith.constant 0 : i32
    %c0_i32_1 = arith.constant 0 : i32
    return %c0_i32, %c0_i32_0 : i32, i32
  }
  func.func @transform_7(%arg0: i32) -> (i32, i32) {
    %c0_i32 = arith.constant 0 : i32
    %c0_i32_0 = arith.constant 0 : i32
    %c0_i32_1 = arith.constant 0 : i32
    return %c0_i32, %c0_i32_0 : i32, i32
  }
  func.func @transform_8(%arg0: i32) -> (i32, i32) {
    %c0_i32 = arith.constant 0 : i32
    %c0_i32_0 = arith.constant 0 : i32
    %c0_i32_1 = arith.constant 0 : i32
    return %c0_i32, %c0_i32_0 : i32, i32
  }
  func.func @transform_9(%arg0: i32) -> (i32, i32) {
    %c0_i32 = arith.constant 0 : i32
    %c0_i32_0 = arith.constant 0 : i32
    %c0_i32_1 = arith.constant 0 : i32
    return %c0_i32, %c0_i32_0 : i32, i32
  }
  func.func @transform_10(%arg0: i32) -> (i32, i32) {
    %c0_i32 = arith.constant 0 : i32
    %c0_i32_0 = arith.constant 0 : i32
    %c0_i32_1 = arith.constant 0 : i32
    return %c0_i32, %c0_i32_0 : i32, i32
  }
  func.func @transform_11(%arg0: i32) -> (i32, i32) {
    %c0_i32 = arith.constant 0 : i32
    %c0_i32_0 = arith.constant 0 : i32
    %c0_i32_1 = arith.constant 0 : i32
    return %c0_i32, %c0_i32_0 : i32, i32
  }
  func.func @transform_12(%arg0: i32) -> (i32, i32) {
    %c0_i32 = arith.constant 0 : i32
    %c0_i32_0 = arith.constant 0 : i32
    %c0_i32_1 = arith.constant 0 : i32
    return %c0_i32, %c0_i32_0 : i32, i32
  }
  func.func @transform_13(%arg0: i32) -> (i32, i32) {
    %c0_i32 = arith.constant 0 : i32
    %c0_i32_0 = arith.constant 0 : i32
    return %arg0, %c0_i32 : i32, i32
  }
}

</mosaic_0001>

<bundles_post_ra>
// kernel: autoencoder_forward.1
= control target key start
LH: loop header
LB: loop body
LE: loop exit
PB: predicated region body
PF: predicated region fallthrough
CT: control target
= control target key end

     0   :  { %s3339_s1 = inlined_call_operand.vmem [shape: bf16[128,128], index: 1, kind: input, shape index: {}]   ;;  %s3340_s0 = inlined_call_operand.vmem [shape: bf16[256,128], index: 0, kind: input, shape index: {}]   ;;  %s3341_s3 = inlined_call_operand.vmem [shape: bf16[128,128], index: 3, kind: input, shape index: {}]   ;;  %s3342_s5 = inlined_call_operand.vmem [shape: bf16[128,128], index: 5, kind: input, shape index: {}]   ;;  %s3343_s2 = inlined_call_operand.vmem [shape: f32[1,128], index: 2, kind: input, shape index: {}]   ;;  %s3344_s7 = inlined_call_operand.vmem [shape: bf16[128,128], index: 7, kind: input, shape index: {}]   ;;  %s3345_s4 = inlined_call_operand.vmem [shape: f32[1,128], index: 4, kind: input, shape index: {}]   ;;  %s3346_s9 = inlined_call_operand.vmem [shape: bf16[128,128], index: 9, kind: input, shape index: {}]   ;;  %s3347_s6 = inlined_call_operand.vmem [shape: f32[1,128], index: 6, kind: input, shape index: {}]   ;;  %s3348_s11 = inlined_call_operand.vmem [shape: bf16[128,128], index: 11, kind: input, shape index: {}]   ;;  %s3349_s8 = inlined_call_operand.vmem [shape: f32[1,128], index: 8, kind: input, shape index: {}]   ;;  %s3350_s10 = inlined_call_operand.vmem [shape: f32[1,128], index: 10, kind: input, shape index: {}]   ;;  %s3351_s12 = inlined_call_operand.vmem [shape: f32[1,128], index: 12, kind: input, shape index: {}]   ;;  %s3352_s13 = inlined_call_operand.vmem [shape: f32[256,128], index: 13, kind: output, shape index: {}]  }
   0x1   :  { %v2567_v0 = vld [vmem:[%s3339_s1 + $0x38] sm:$0xff]   ;;  %v2568_v1 = vld [vmem:[%s3339_s1 + $0x30] sm:$0xff]   ;;  %v2569_v2 = vld [vmem:[%s3339_s1 + $0x28] sm:$0xff]  }
   0x2   :  { %2279 = vmatprep.subr.bf16.mxu0 %v2567_v0  ;;  %v2570_v3 = vld [vmem:[%s3339_s1 + $0x20] sm:$0xff]   ;;  %v2571_v5 = vld [vmem:[%s3339_s1 + $0x18] sm:$0xff]   ;;  %v2572_v6 = vld [vmem:[%s3339_s1 + $0x10] sm:$0xff]  }
   0x3   :  { %2280 = vmatpush3.bf16.msra.mxu0 %v2567_v0  ;;  %v2575_v4 = vld [vmem:[%s3340_s0] sm:$0xff]   ;;  %v2573_v7 = vld [vmem:[%s3339_s1 + $0x8] sm:$0xff]   ;;  %v2591_v9 = vld [vmem:[%s3341_s3 + $0x38] sm:$0xff]  }
   0x4   :  { %2281 = vmatprep.subr.bf16.mxu0 %v2568_v1  ;;  %2295 = vmatprep.mubr.bf16.mxu0 %v2575_v4  ;;  %v2574_v8 = vld [vmem:[%s3339_s1] sm:$0xff]   ;;  %v2592_v10 = vld [vmem:[%s3341_s3 + $0x30] sm:$0xff]   ;;  %v2576_v11 = vld [vmem:[%s3340_s0 + $0x8] sm:$0xff]  }
   0x5   :  { %2327 = vmatprep.subr.bf16.mxu1 %v2591_v9  ;;  %v2593_v12 = vld [vmem:[%s3341_s3 + $0x28] sm:$0xff]   ;;  %v2577_v13 = vld [vmem:[%s3340_s0 + $0x10] sm:$0xff]   ;;  %v2594_v14 = vld [vmem:[%s3341_s3 + $0x20] sm:$0xff]  }
   0x6   :  { %2328 = vmatpush3.bf16.msra.mxu1 %v2591_v9  ;;  %v2595_v15 = vld [vmem:[%s3341_s3 + $0x18] sm:$0xff]   ;;  %v2579_v17 = vld [vmem:[%s3340_s0 + $0x20] sm:$0xff]   ;;  %v2580_v18 = vld [vmem:[%s3340_s0 + $0x28] sm:$0xff]  }
   0x7   :  { %2282 = vmatpush3.bf16.msra.mxu0 %v2568_v1  ;;  %2329 = vmatprep.subr.bf16.mxu1 %v2592_v10  ;;  %v2578_v16 = vld [vmem:[%s3340_s0 + $0x18] sm:$0xff]   ;;  %v2581_v19 = vld [vmem:[%s3340_s0 + $0x30] sm:$0xff]   ;;  %v2583_v21 = vld [vmem:[%s3340_s0 + $0x40] sm:$0xff]  }
   0x8   :  { %2283 = vmatprep.subr.bf16.mxu0 %v2569_v2  ;;  %v2582_v20 = vld [vmem:[%s3340_s0 + $0x38] sm:$0xff]   ;;  %v2584_v22 = vld [vmem:[%s3340_s0 + $0x48] sm:$0xff]   ;;  %v2585_v23 = vld [vmem:[%s3340_s0 + $0x50] sm:$0xff]  }
   0x9   :  { %v2586_v24 = vld [vmem:[%s3340_s0 + $0x58] sm:$0xff]   ;;  %v2587_v25 = vld [vmem:[%s3340_s0 + $0x60] sm:$0xff]   ;;  %v2588_v26 = vld [vmem:[%s3340_s0 + $0x68] sm:$0xff]  }
   0xa   :  { %2330 = vmatpush3.bf16.msra.mxu1 %v2592_v10  ;;  %v2589_v27 = vld [vmem:[%s3340_s0 + $0x70] sm:$0xff]   ;;  %v2590_v28 = vld [vmem:[%s3340_s0 + $0x78] sm:$0xff]   ;;  %v2597_v30 = vld [vmem:[%s3341_s3 + $0x8] sm:$0xff]  }
   0xb   :  { %2284 = vmatpush3.bf16.msra.mxu0 %v2569_v2  ;;  %2331 = vmatprep.subr.bf16.mxu1 %v2593_v12  ;;  %v2596_v29 = vld [vmem:[%s3341_s3 + $0x10] sm:$0xff]   ;;  %v2598_v31 = vld [vmem:[%s3341_s3] sm:$0xff]   ;;  %v2599_v32 = vld [vmem:[%s3342_s5 + $0x38] sm:$0xff]  }
   0xc   :  { %2285 = vmatprep.subr.bf16.mxu0 %v2570_v3  ;;  %v2600_v33 = vld [vmem:[%s3342_s5 + $0x30] sm:$0xff]   ;;  %v2601_v34 = vld [vmem:[%s3342_s5 + $0x28] sm:$0xff]   ;;  %v2602_v35 = vld [vmem:[%s3342_s5 + $0x20] sm:$0xff]  }
   0xd   :  { %v2603_v36 = vld [vmem:[%s3342_s5 + $0x18] sm:$0xff]   ;;  %v2604_v37 = vld [vmem:[%s3342_s5 + $0x10] sm:$0xff]   ;;  %v2605_v38 = vld [vmem:[%s3342_s5 + $0x8] sm:$0xff]  }
   0xe   :  { %2332 = vmatpush3.bf16.msra.mxu1 %v2593_v12  ;;  %v2949_v41 = vld [vmem:[%s3343_s2] ss:$0 sm:$0xff] }
   0xf   :  { %2286 = vmatpush3.bf16.msra.mxu0 %v2570_v3  ;;  %2333 = vmatprep.subr.bf16.mxu1 %v2594_v14 }
  0x10   :  { %2287 = vmatprep.subr.bf16.mxu0 %v2571_v5 }
  0x12   :  { %2334 = vmatpush3.bf16.msra.mxu1 %v2594_v14 }
  0x13   :  { %2288 = vmatpush3.bf16.msra.mxu0 %v2571_v5  ;;  %2335 = vmatprep.subr.bf16.mxu1 %v2595_v15 }
  0x14   :  { %2289 = vmatprep.subr.bf16.mxu0 %v2572_v6 }
  0x16   :  { %2336 = vmatpush3.bf16.msra.mxu1 %v2595_v15 }
  0x17   :  { %2290 = vmatpush3.bf16.msra.mxu0 %v2572_v6  ;;  %2337 = vmatprep.subr.bf16.mxu1 %v2596_v29 }
  0x18   :  { %2291 = vmatprep.subr.bf16.mxu0 %v2573_v7 }
  0x1a   :  { %2338 = vmatpush3.bf16.msra.mxu1 %v2596_v29 }
  0x1b   :  { %2292 = vmatpush3.bf16.msra.mxu0 %v2573_v7  ;;  %2339 = vmatprep.subr.bf16.mxu1 %v2597_v30 }
  0x1c   :  { %2293 = vmatprep.subr.bf16.mxu0 %v2574_v8 }
  0x1e   :  { %2340 = vmatpush3.bf16.msra.mxu1 %v2597_v30 }
  0x1f   :  { %2294 = vmatpush3.bf16.msra.mxu0 %v2574_v8  ;;  %2341 = vmatprep.subr.bf16.mxu1 %v2598_v31 }
  0x20   :  { %2375 = vmatprep.subr.bf16.mxu0 %v2599_v32 }
  0x22   :  { %2296 = vmatmul.mubr.bf16.vlgmr.msra.gmra.mxu0 %v2576_v11  ;;  %2342 = vmatpush3.bf16.msra.mxu1 %v2598_v31 }
  0x23   :  { %2299 = vmatprep.mubr.bf16.mxu0 %v2577_v13  ;;  %2376 = vmatpush3.bf16.msra.mxu0 %v2599_v32 }
  0x24   :  { %2377 = vmatprep.subr.bf16.mxu0 %v2600_v33 }
  0x27   :  { %2378 = vmatpush3.bf16.msra.mxu0 %v2600_v33 }
  0x28   :  { %2379 = vmatprep.subr.bf16.mxu0 %v2601_v34 }
  0x2a   :  { %2300 = vmatmul.mubr.bf16.gmra.mxu0 %v2578_v16 }
  0x2b   :  { %2303 = vmatprep.mubr.bf16.mxu0 %v2579_v17  ;;  %2380 = vmatpush3.bf16.msra.mxu0 %v2601_v34 }
  0x2c   :  { %2381 = vmatprep.subr.bf16.mxu0 %v2602_v35 }
  0x2f   :  { %2382 = vmatpush3.bf16.msra.mxu0 %v2602_v35 }
  0x30   :  { %2383 = vmatprep.subr.bf16.mxu0 %v2603_v36 }
  0x32   :  { %2304 = vmatmul.mubr.bf16.gmra.mxu0 %v2580_v18 }
  0x33   :  { %2307 = vmatprep.mubr.bf16.mxu0 %v2581_v19  ;;  %2384 = vmatpush3.bf16.msra.mxu0 %v2603_v36 }
  0x34   :  { %2385 = vmatprep.subr.bf16.mxu0 %v2604_v37 }
  0x37   :  { %2386 = vmatpush3.bf16.msra.mxu0 %v2604_v37 }
  0x38   :  { %2387 = vmatprep.subr.bf16.mxu0 %v2605_v38 }
  0x3a   :  { %2308 = vmatmul.mubr.bf16.gmra.mxu0 %v2582_v20 }
  0x3b   :  { %2311 = vmatprep.mubr.bf16.mxu0 %v2583_v21  ;;  %2388 = vmatpush3.bf16.msra.mxu0 %v2605_v38 }
  0x42   :  { %2312 = vmatmul.mubr.bf16.gmra.mxu0 %v2584_v22 }
  0x43   :  { %2315 = vmatprep.mubr.bf16.mxu0 %v2585_v23 }
  0x4a   :  { %2316 = vmatmul.mubr.bf16.gmra.mxu0 %v2586_v24 }
  0x4b   :  { %2319 = vmatprep.mubr.bf16.mxu0 %v2587_v25 }
  0x52   :  { %2320 = vmatmul.mubr.bf16.gmra.mxu0 %v2588_v26 }
  0x53   :  { %2323 = vmatprep.mubr.bf16.mxu0 %v2589_v27 }
  0x5a   :  { %2324 = vmatmul.mubr.bf16.gmra.mxu0 %v2590_v28 }
  0xe2   :  { %v2297_v39 = vpop.f32.mrf.mxu0 }
  0xe3   :  { %v287_v45 = vadd.f32 %v2297_v39, %v2949_v41 }
  0xe4   :  { %v278_v40 = vpop.f32.mrf.mxu0 }
  0xe5   :  { %v279_v43 = vadd.f32 %v2949_v41, %v278_v40  ;;  %v407_v52 = vmax.f32 %v287_v45, 0.0 }
  0xe6   :  { %v2298_v42 = vpop.f32.mrf.mxu0 }
  0xe7   :  { %v290_v44 = vadd.f32 %v2298_v42, %v2949_v41  ;;  %v405_v50 = vmax.f32 %v279_v43, 0.0 }
  0xe8   :  { %v281_v46 = vpop.f32.mrf.mxu0 }
  0xe9   :  { %v282_v47 = vadd.f32 %v2949_v41, %v281_v46  ;;  %v408_v48 = vmax.f32 %v290_v44, 0.0 }
  0xea   :  { %v2301_v49 = vpop.f32.mrf.mxu0 }
  0xeb   :  { %v406_v51 = vmax.f32 %v282_v47, 0.0  ;;  %v438_v55 = vpack.c.bf16 %v408_v48, %v407_v52  ;;  %v303_v59 = vadd.f32 %v2301_v49, %v2949_v41 }
  0xec   :  { %v294_v53 = vpop.f32.mrf.mxu0 }
  0xed   :  { %v437_v54 = vpack.c.bf16 %v406_v51, %v405_v50  ;;  %v295_v57 = vadd.f32 %v2949_v41, %v294_v53  ;;  %v411_v2 = vmax.f32 %v303_v59, 0.0 }
  0xee   :  { %v2302_v56 = vpop.f32.mrf.mxu0 }
  0xef   :  { %v306_v58 = vadd.f32 %v2302_v56, %v2949_v41  ;;  %2343 = vmatprep.mubr.bf16.mxu1 %v437_v54  ;;  %v409_v0 = vmax.f32 %v295_v57, 0.0 }
  0xf0   :  { %v297_v60 = vpop.f32.mrf.mxu0  ;;  %2344 = vmatmul.mubr.bf16.vlgmr.msra.gmra.mxu1 %v438_v55 }
  0xf1   :  { %v298_v61 = vadd.f32 %v2949_v41, %v297_v60  ;;  %v412_v62 = vmax.f32 %v306_v58, 0.0 }
  0xf2   :  { %v2305_v63 = vpop.f32.mrf.mxu0 }
  0xf3   :  { %v410_v1 = vmax.f32 %v298_v61, 0.0  ;;  %v440_v5 = vpack.c.bf16 %v412_v62, %v411_v2  ;;  %v319_v9 = vadd.f32 %v2305_v63, %v2949_v41 }
  0xf4   :  { %v310_v3 = vpop.f32.mrf.mxu0 }
  0xf5   :  { %v439_v4 = vpack.c.bf16 %v410_v1, %v409_v0  ;;  %v311_v7 = vadd.f32 %v2949_v41, %v310_v3  ;;  %v415_v16 = vmax.f32 %v319_v9, 0.0 }
  0xf6   :  { %v2306_v6 = vpop.f32.mrf.mxu0 }
  0xf7   :  { %v322_v8 = vadd.f32 %v2306_v6, %v2949_v41  ;;  %2347 = vmatprep.mubr.bf16.mxu1 %v439_v4  ;;  %v413_v14 = vmax.f32 %v311_v7, 0.0 }
  0xf8   :  { %v313_v10 = vpop.f32.mrf.mxu0  ;;  %2348 = vmatmul.mubr.bf16.gmra.mxu1 %v440_v5 }
  0xf9   :  { %v314_v11 = vadd.f32 %v2949_v41, %v313_v10  ;;  %v416_v12 = vmax.f32 %v322_v8, 0.0 }
  0xfa   :  { %v2309_v13 = vpop.f32.mrf.mxu0 }
  0xfb   :  { %v414_v15 = vmax.f32 %v314_v11, 0.0  ;;  %v442_v19 = vpack.c.bf16 %v416_v12, %v415_v16  ;;  %v335_v23 = vadd.f32 %v2309_v13, %v2949_v41 }
  0xfc   :  { %v326_v17 = vpop.f32.mrf.mxu0 }
  0xfd   :  { %v441_v18 = vpack.c.bf16 %v414_v15, %v413_v14  ;;  %v327_v21 = vadd.f32 %v2949_v41, %v326_v17  ;;  %v419_v30 = vmax.f32 %v335_v23, 0.0 }
  0xfe   :  { %v2310_v20 = vpop.f32.mrf.mxu0 }
  0xff   :  { %v338_v22 = vadd.f32 %v2310_v20, %v2949_v41  ;;  %2351 = vmatprep.mubr.bf16.mxu1 %v441_v18  ;;  %v417_v28 = vmax.f32 %v327_v21, 0.0 }
 0x100   :  { %v329_v24 = vpop.f32.mrf.mxu0  ;;  %2352 = vmatmul.mubr.bf16.gmra.mxu1 %v442_v19 }
 0x101   :  { %v330_v25 = vadd.f32 %v2949_v41, %v329_v24  ;;  %v420_v26 = vmax.f32 %v338_v22, 0.0 }
 0x102   :  { %v2313_v27 = vpop.f32.mrf.mxu0 }
 0x103   :  { %v418_v29 = vmax.f32 %v330_v25, 0.0  ;;  %v444_v33 = vpack.c.bf16 %v420_v26, %v419_v30  ;;  %v351_v37 = vadd.f32 %v2313_v27, %v2949_v41  ;;  %v2606_v25 = vld [vmem:[%s3342_s5] sm:$0xff]   ;;  %v2607_v26 = vld [vmem:[%s3344_s7 + $0x38] sm:$0xff]   ;;  %v2609_v27 = vld [vmem:[%s3344_s7 + $0x28] sm:$0xff]  }
 0x104   :  { %v342_v31 = vpop.f32.mrf.mxu0  ;;  %2389 = vmatprep.subr.bf16.mxu0 %v2606_v25  ;;  %2423 = vmatprep.subr.bf16.mxu1 %v2607_v26  ;;  %v2612_v30 = vld [vmem:[%s3344_s7 + $0x10] sm:$0xff]  }
 0x105   :  { %v443_v32 = vpack.c.bf16 %v418_v29, %v417_v28  ;;  %v343_v35 = vadd.f32 %v2949_v41, %v342_v31  ;;  %v423_v45 = vmax.f32 %v351_v37, 0.0  ;;  %2390 = vmatpush3.bf16.msra.mxu0 %v2606_v25  ;;  %2424 = vmatpush3.bf16.msra.mxu1 %v2607_v26  ;;  %v2610_v28 = vld [vmem:[%s3344_s7 + $0x20] sm:$0xff]   ;;  %v2611_v29 = vld [vmem:[%s3344_s7 + $0x18] sm:$0xff]   ;;  %v2613_v31 = vld [vmem:[%s3344_s7 + $0x8] sm:$0xff]  }
 0x106   :  { %v2314_v34 = vpop.f32.mrf.mxu0 }
 0x107   :  { %v354_v36 = vadd.f32 %v2314_v34, %v2949_v41  ;;  %2355 = vmatprep.mubr.bf16.mxu1 %v443_v32  ;;  %v421_v43 = vmax.f32 %v343_v35, 0.0  ;;  %v3010_v34 = vld [vmem:[%s3345_s4] ss:$0 sm:$0xff] }
 0x108   :  { %v345_v38 = vpop.f32.mrf.mxu0  ;;  %2356 = vmatmul.mubr.bf16.gmra.mxu1 %v444_v33 }
 0x109   :  { %v346_v39 = vadd.f32 %v2949_v41, %v345_v38  ;;  %v424_v40 = vmax.f32 %v354_v36, 0.0 }
 0x10a   :  { %v2317_v42 = vpop.f32.mrf.mxu0 }
 0x10b   :  { %v422_v44 = vmax.f32 %v346_v39, 0.0  ;;  %v446_v48 = vpack.c.bf16 %v424_v40, %v423_v45  ;;  %v367_v52 = vadd.f32 %v2317_v42, %v2949_v41 }
 0x10c   :  { %v358_v46 = vpop.f32.mrf.mxu0 }
 0x10d   :  { %v445_v47 = vpack.c.bf16 %v422_v44, %v421_v43  ;;  %v359_v50 = vadd.f32 %v2949_v41, %v358_v46  ;;  %v427_v59 = vmax.f32 %v367_v52, 0.0 }
 0x10e   :  { %v2318_v49 = vpop.f32.mrf.mxu0 }
 0x10f   :  { %v370_v51 = vadd.f32 %v2318_v49, %v2949_v41  ;;  %2359 = vmatprep.mubr.bf16.mxu1 %v445_v47  ;;  %v425_v57 = vmax.f32 %v359_v50, 0.0 }
 0x110   :  { %v361_v53 = vpop.f32.mrf.mxu0  ;;  %2360 = vmatmul.mubr.bf16.gmra.mxu1 %v446_v48 }
 0x111   :  { %v362_v54 = vadd.f32 %v2949_v41, %v361_v53  ;;  %v428_v55 = vmax.f32 %v370_v51, 0.0 }
 0x112   :  { %v2321_v56 = vpop.f32.mrf.mxu0 }
 0x113   :  { %v426_v58 = vmax.f32 %v362_v54, 0.0  ;;  %v448_v62 = vpack.c.bf16 %v428_v55, %v427_v59  ;;  %v383_v2 = vadd.f32 %v2321_v56, %v2949_v41 }
 0x114   :  { %v374_v60 = vpop.f32.mrf.mxu0 }
 0x115   :  { %v447_v61 = vpack.c.bf16 %v426_v58, %v425_v57  ;;  %v375_v0 = vadd.f32 %v2949_v41, %v374_v60  ;;  %v431_v9 = vmax.f32 %v383_v2, 0.0 }
 0x116   :  { %v2322_v63 = vpop.f32.mrf.mxu0 }
 0x117   :  { %v386_v1 = vadd.f32 %v2322_v63, %v2949_v41  ;;  %2363 = vmatprep.mubr.bf16.mxu1 %v447_v61  ;;  %v429_v7 = vmax.f32 %v375_v0, 0.0 }
 0x118   :  { %v377_v3 = vpop.f32.mrf.mxu0  ;;  %2364 = vmatmul.mubr.bf16.gmra.mxu1 %v448_v62 }
 0x119   :  { %v378_v4 = vadd.f32 %v2949_v41, %v377_v3  ;;  %v432_v5 = vmax.f32 %v386_v1, 0.0 }
 0x11a   :  { %v2325_v6 = vpop.f32.mrf.mxu0 }
 0x11b   :  { %v430_v8 = vmax.f32 %v378_v4, 0.0  ;;  %v450_v12 = vpack.c.bf16 %v432_v5, %v431_v9  ;;  %v399_v16 = vadd.f32 %v2325_v6, %v2949_v41 }
 0x11c   :  { %v390_v10 = vpop.f32.mrf.mxu0 }
 0x11d   :  { %v449_v11 = vpack.c.bf16 %v430_v8, %v429_v7  ;;  %v391_v14 = vadd.f32 %v2949_v41, %v390_v10  ;;  %v435_v22 = vmax.f32 %v399_v16, 0.0 }
 0x11e   :  { %v2326_v13 = vpop.f32.mrf.mxu0 }
 0x11f   :  { %v402_v15 = vadd.f32 %v2326_v13, %v2949_v41  ;;  %2367 = vmatprep.mubr.bf16.mxu1 %v449_v11  ;;  %v433_v20 = vmax.f32 %v391_v14, 0.0 }
 0x120   :  { %v393_v17 = vpop.f32.mrf.mxu0  ;;  %2368 = vmatmul.mubr.bf16.gmra.mxu1 %v450_v12 }
 0x121   :  { %v394_v18 = vadd.f32 %v2949_v41, %v393_v17  ;;  %v436_v19 = vmax.f32 %v402_v15, 0.0  ;;  %v2608_v41 = vld [vmem:[%s3344_s7 + $0x30] sm:$0xff]  }
 0x122   :  { %2425 = vmatprep.subr.bf16.mxu1 %v2608_v41 }
 0x123   :  { %v434_v21 = vmax.f32 %v394_v18, 0.0  ;;  %v452_v24 = vpack.c.bf16 %v436_v19, %v435_v22  ;;  %2426 = vmatpush3.bf16.msra.mxu1 %v2608_v41 }
 0x124   :  { %2427 = vmatprep.subr.bf16.mxu1 %v2609_v27 }
 0x125   :  { %v451_v23 = vpack.c.bf16 %v434_v21, %v433_v20 }
 0x127   :  { %2371 = vmatprep.mubr.bf16.mxu1 %v451_v23  ;;  %2428 = vmatpush3.bf16.msra.mxu1 %v2609_v27 }
 0x128   :  { %2372 = vmatmul.mubr.bf16.gmra.mxu1 %v452_v24  ;;  %2429 = vmatprep.subr.bf16.mxu1 %v2610_v28 }
 0x12b   :  { %2430 = vmatpush3.bf16.msra.mxu1 %v2610_v28 }
 0x12c   :  { %2431 = vmatprep.subr.bf16.mxu1 %v2611_v29 }
 0x12f   :  { %2432 = vmatpush3.bf16.msra.mxu1 %v2611_v29 }
 0x130   :  { %2433 = vmatprep.subr.bf16.mxu1 %v2612_v30 }
 0x133   :  { %2434 = vmatpush3.bf16.msra.mxu1 %v2612_v30 }
 0x134   :  { %2435 = vmatprep.subr.bf16.mxu1 %v2613_v31 }
 0x137   :  { %2436 = vmatpush3.bf16.msra.mxu1 %v2613_v31 }
 0x1b0   :  { %v2345_v32 = vpop.f32.mrf.mxu1 }
 0x1b1   :  { %v567_v38 = vadd.f32 %v2345_v32, %v3010_v34 }
 0x1b2   :  { %v558_v33 = vpop.f32.mrf.mxu1 }
 0x1b3   :  { %v559_v36 = vadd.f32 %v3010_v34, %v558_v33  ;;  %v687_v46 = vmax.f32 %v567_v38, 0.0 }
 0x1b4   :  { %v2346_v35 = vpop.f32.mrf.mxu1 }
 0x1b5   :  { %v570_v37 = vadd.f32 %v2346_v35, %v3010_v34  ;;  %v685_v44 = vmax.f32 %v559_v36, 0.0 }
 0x1b6   :  { %v561_v39 = vpop.f32.mrf.mxu1 }
 0x1b7   :  { %v562_v40 = vadd.f32 %v3010_v34, %v561_v39  ;;  %v688_v42 = vmax.f32 %v570_v37, 0.0 }
 0x1b8   :  { %v2349_v43 = vpop.f32.mrf.mxu1 }
 0x1b9   :  { %v686_v45 = vmax.f32 %v562_v40, 0.0  ;;  %v718_v49 = vpack.c.bf16 %v688_v42, %v687_v46  ;;  %v583_v53 = vadd.f32 %v2349_v43, %v3010_v34 }
 0x1ba   :  { %v574_v47 = vpop.f32.mrf.mxu1 }
 0x1bb   :  { %v717_v48 = vpack.c.bf16 %v686_v45, %v685_v44  ;;  %v575_v51 = vadd.f32 %v3010_v34, %v574_v47  ;;  %v691_v60 = vmax.f32 %v583_v53, 0.0 }
 0x1bc   :  { %v2350_v50 = vpop.f32.mrf.mxu1 }
 0x1bd   :  { %v586_v52 = vadd.f32 %v2350_v50, %v3010_v34  ;;  %2391 = vmatprep.mubr.bf16.mxu0 %v717_v48  ;;  %v689_v58 = vmax.f32 %v575_v51, 0.0 }
 0x1be   :  { %v577_v54 = vpop.f32.mrf.mxu1  ;;  %2392 = vmatmul.mubr.bf16.vlgmr.msra.gmra.mxu0 %v718_v49 }
 0x1bf   :  { %v578_v55 = vadd.f32 %v3010_v34, %v577_v54  ;;  %v692_v56 = vmax.f32 %v586_v52, 0.0 }
 0x1c0   :  { %v2353_v57 = vpop.f32.mrf.mxu1 }
 0x1c1   :  { %v690_v59 = vmax.f32 %v578_v55, 0.0  ;;  %v720_v63 = vpack.c.bf16 %v692_v56, %v691_v60  ;;  %v599_v3 = vadd.f32 %v2353_v57, %v3010_v34 }
 0x1c2   :  { %v590_v61 = vpop.f32.mrf.mxu1 }
 0x1c3   :  { %v719_v62 = vpack.c.bf16 %v690_v59, %v689_v58  ;;  %v591_v1 = vadd.f32 %v3010_v34, %v590_v61  ;;  %v695_v10 = vmax.f32 %v599_v3, 0.0 }
 0x1c4   :  { %v2354_v0 = vpop.f32.mrf.mxu1 }
 0x1c5   :  { %v602_v2 = vadd.f32 %v2354_v0, %v3010_v34  ;;  %2395 = vmatprep.mubr.bf16.mxu0 %v719_v62  ;;  %v693_v8 = vmax.f32 %v591_v1, 0.0 }
 0x1c6   :  { %v593_v4 = vpop.f32.mrf.mxu1  ;;  %2396 = vmatmul.mubr.bf16.gmra.mxu0 %v720_v63 }
 0x1c7   :  { %v594_v5 = vadd.f32 %v3010_v34, %v593_v4  ;;  %v696_v6 = vmax.f32 %v602_v2, 0.0 }
 0x1c8   :  { %v2357_v7 = vpop.f32.mrf.mxu1 }
 0x1c9   :  { %v694_v9 = vmax.f32 %v594_v5, 0.0  ;;  %v722_v13 = vpack.c.bf16 %v696_v6, %v695_v10  ;;  %v615_v17 = vadd.f32 %v2357_v7, %v3010_v34 }
 0x1ca   :  { %v606_v11 = vpop.f32.mrf.mxu1 }
 0x1cb   :  { %v721_v12 = vpack.c.bf16 %v694_v9, %v693_v8  ;;  %v607_v15 = vadd.f32 %v3010_v34, %v606_v11  ;;  %v699_v24 = vmax.f32 %v615_v17, 0.0 }
 0x1cc   :  { %v2358_v14 = vpop.f32.mrf.mxu1 }
 0x1cd   :  { %v618_v16 = vadd.f32 %v2358_v14, %v3010_v34  ;;  %2399 = vmatprep.mubr.bf16.mxu0 %v721_v12  ;;  %v697_v22 = vmax.f32 %v607_v15, 0.0 }
 0x1ce   :  { %v609_v18 = vpop.f32.mrf.mxu1  ;;  %2400 = vmatmul.mubr.bf16.gmra.mxu0 %v722_v13 }
 0x1cf   :  { %v610_v19 = vadd.f32 %v3010_v34, %v609_v18  ;;  %v700_v20 = vmax.f32 %v618_v16, 0.0 }
 0x1d0   :  { %v2361_v21 = vpop.f32.mrf.mxu1 }
 0x1d1   :  { %v698_v23 = vmax.f32 %v610_v19, 0.0  ;;  %v724_v41 = vpack.c.bf16 %v700_v20, %v699_v24  ;;  %v631_v30 = vadd.f32 %v2361_v21, %v3010_v34  ;;  %v2614_v19 = vld [vmem:[%s3344_s7] sm:$0xff]   ;;  %v2615_v20 = vld [vmem:[%s3346_s9 + $0x38] sm:$0xff]   ;;  %v2617_v21 = vld [vmem:[%s3346_s9 + $0x28] sm:$0xff]  }
 0x1d2   :  { %v622_v25 = vpop.f32.mrf.mxu1  ;;  %2437 = vmatprep.subr.bf16.mxu1 %v2614_v19  ;;  %2471 = vmatprep.subr.bf16.mxu0 %v2615_v20  ;;  %v2620_v24 = vld [vmem:[%s3346_s9 + $0x10] sm:$0xff]  }
 0x1d3   :  { %v723_v26 = vpack.c.bf16 %v698_v23, %v697_v22  ;;  %v623_v28 = vadd.f32 %v3010_v34, %v622_v25  ;;  %v703_v38 = vmax.f32 %v631_v30, 0.0  ;;  %2438 = vmatpush3.bf16.msra.mxu1 %v2614_v19  ;;  %2472 = vmatpush3.bf16.msra.mxu0 %v2615_v20  ;;  %v2618_v22 = vld [vmem:[%s3346_s9 + $0x20] sm:$0xff]   ;;  %v2619_v23 = vld [vmem:[%s3346_s9 + $0x18] sm:$0xff]   ;;  %v2621_v25 = vld [vmem:[%s3346_s9 + $0x8] sm:$0xff]  }
 0x1d4   :  { %v2362_v27 = vpop.f32.mrf.mxu1 }
 0x1d5   :  { %v634_v29 = vadd.f32 %v2362_v27, %v3010_v34  ;;  %2403 = vmatprep.mubr.bf16.mxu0 %v723_v26  ;;  %v701_v36 = vmax.f32 %v623_v28, 0.0  ;;  %v3071_v27 = vld [vmem:[%s3347_s6] ss:$0 sm:$0xff] }
 0x1d6   :  { %v625_v31 = vpop.f32.mrf.mxu1  ;;  %2404 = vmatmul.mubr.bf16.gmra.mxu0 %v724_v41 }
 0x1d7   :  { %v626_v32 = vadd.f32 %v3010_v34, %v625_v31  ;;  %v704_v33 = vmax.f32 %v634_v29, 0.0 }
 0x1d8   :  { %v2365_v35 = vpop.f32.mrf.mxu1 }
 0x1d9   :  { %v702_v37 = vmax.f32 %v626_v32, 0.0  ;;  %v726_v42 = vpack.c.bf16 %v704_v33, %v703_v38  ;;  %v647_v46 = vadd.f32 %v2365_v35, %v3010_v34 }
 0x1da   :  { %v638_v39 = vpop.f32.mrf.mxu1 }
 0x1db   :  { %v725_v40 = vpack.c.bf16 %v702_v37, %v701_v36  ;;  %v639_v44 = vadd.f32 %v3010_v34, %v638_v39  ;;  %v707_v53 = vmax.f32 %v647_v46, 0.0 }
 0x1dc   :  { %v2366_v43 = vpop.f32.mrf.mxu1 }
 0x1dd   :  { %v650_v45 = vadd.f32 %v2366_v43, %v3010_v34  ;;  %2407 = vmatprep.mubr.bf16.mxu0 %v725_v40  ;;  %v705_v51 = vmax.f32 %v639_v44, 0.0 }
 0x1de   :  { %v641_v47 = vpop.f32.mrf.mxu1  ;;  %2408 = vmatmul.mubr.bf16.gmra.mxu0 %v726_v42 }
 0x1df   :  { %v642_v48 = vadd.f32 %v3010_v34, %v641_v47  ;;  %v708_v49 = vmax.f32 %v650_v45, 0.0 }
 0x1e0   :  { %v2369_v50 = vpop.f32.mrf.mxu1 }
 0x1e1   :  { %v706_v52 = vmax.f32 %v642_v48, 0.0  ;;  %v728_v56 = vpack.c.bf16 %v708_v49, %v707_v53  ;;  %v663_v60 = vadd.f32 %v2369_v50, %v3010_v34 }
 0x1e2   :  { %v654_v54 = vpop.f32.mrf.mxu1 }
 0x1e3   :  { %v727_v55 = vpack.c.bf16 %v706_v52, %v705_v51  ;;  %v655_v58 = vadd.f32 %v3010_v34, %v654_v54  ;;  %v711_v3 = vmax.f32 %v663_v60, 0.0 }
 0x1e4   :  { %v2370_v57 = vpop.f32.mrf.mxu1 }
 0x1e5   :  { %v666_v59 = vadd.f32 %v2370_v57, %v3010_v34  ;;  %2411 = vmatprep.mubr.bf16.mxu0 %v727_v55  ;;  %v709_v1 = vmax.f32 %v655_v58, 0.0 }
 0x1e6   :  { %v657_v61 = vpop.f32.mrf.mxu1  ;;  %2412 = vmatmul.mubr.bf16.gmra.mxu0 %v728_v56 }
 0x1e7   :  { %v658_v62 = vadd.f32 %v3010_v34, %v657_v61  ;;  %v712_v63 = vmax.f32 %v666_v59, 0.0 }
 0x1e8   :  { %v2373_v0 = vpop.f32.mrf.mxu1 }
 0x1e9   :  { %v710_v2 = vmax.f32 %v658_v62, 0.0  ;;  %v730_v6 = vpack.c.bf16 %v712_v63, %v711_v3  ;;  %v679_v10 = vadd.f32 %v2373_v0, %v3010_v34 }
 0x1ea   :  { %v670_v4 = vpop.f32.mrf.mxu1 }
 0x1eb   :  { %v729_v5 = vpack.c.bf16 %v710_v2, %v709_v1  ;;  %v671_v8 = vadd.f32 %v3010_v34, %v670_v4  ;;  %v715_v16 = vmax.f32 %v679_v10, 0.0 }
 0x1ec   :  { %v2374_v7 = vpop.f32.mrf.mxu1 }
 0x1ed   :  { %v682_v9 = vadd.f32 %v2374_v7, %v3010_v34  ;;  %2415 = vmatprep.mubr.bf16.mxu0 %v729_v5  ;;  %v713_v14 = vmax.f32 %v671_v8, 0.0 }
 0x1ee   :  { %v673_v11 = vpop.f32.mrf.mxu1  ;;  %2416 = vmatmul.mubr.bf16.gmra.mxu0 %v730_v6 }
 0x1ef   :  { %v674_v12 = vadd.f32 %v3010_v34, %v673_v11  ;;  %v716_v13 = vmax.f32 %v682_v9, 0.0  ;;  %v2616_v34 = vld [vmem:[%s3346_s9 + $0x30] sm:$0xff]  }
 0x1f0   :  { %2473 = vmatprep.subr.bf16.mxu0 %v2616_v34 }
 0x1f1   :  { %v714_v15 = vmax.f32 %v674_v12, 0.0  ;;  %v732_v18 = vpack.c.bf16 %v716_v13, %v715_v16  ;;  %2474 = vmatpush3.bf16.msra.mxu0 %v2616_v34 }
 0x1f2   :  { %2475 = vmatprep.subr.bf16.mxu0 %v2617_v21 }
 0x1f3   :  { %v731_v17 = vpack.c.bf16 %v714_v15, %v713_v14 }
 0x1f5   :  { %2419 = vmatprep.mubr.bf16.mxu0 %v731_v17  ;;  %2476 = vmatpush3.bf16.msra.mxu0 %v2617_v21 }
 0x1f6   :  { %2420 = vmatmul.mubr.bf16.gmra.mxu0 %v732_v18  ;;  %2477 = vmatprep.subr.bf16.mxu0 %v2618_v22 }
 0x1f9   :  { %2478 = vmatpush3.bf16.msra.mxu0 %v2618_v22 }
 0x1fa   :  { %2479 = vmatprep.subr.bf16.mxu0 %v2619_v23 }
 0x1fd   :  { %2480 = vmatpush3.bf16.msra.mxu0 %v2619_v23 }
 0x1fe   :  { %2481 = vmatprep.subr.bf16.mxu0 %v2620_v24 }
 0x201   :  { %2482 = vmatpush3.bf16.msra.mxu0 %v2620_v24 }
 0x202   :  { %2483 = vmatprep.subr.bf16.mxu0 %v2621_v25 }
 0x205   :  { %2484 = vmatpush3.bf16.msra.mxu0 %v2621_v25 }
 0x27e   :  { %v2393_v26 = vpop.f32.mrf.mxu0 }
 0x27f   :  { %v847_v31 = vadd.f32 %v2393_v26, %v3071_v27 }
 0x280   :  { %v838_v41 = vpop.f32.mrf.mxu0 }
 0x281   :  { %v839_v29 = vadd.f32 %v3071_v27, %v838_v41  ;;  %v967_v39 = vmax.f32 %v847_v31, 0.0 }
 0x282   :  { %v2394_v28 = vpop.f32.mrf.mxu0 }
 0x283   :  { %v850_v30 = vadd.f32 %v2394_v28, %v3071_v27  ;;  %v965_v37 = vmax.f32 %v839_v29, 0.0 }
 0x284   :  { %v841_v32 = vpop.f32.mrf.mxu0 }
 0x285   :  { %v842_v33 = vadd.f32 %v3071_v27, %v841_v32  ;;  %v968_v35 = vmax.f32 %v850_v30, 0.0 }
 0x286   :  { %v2397_v36 = vpop.f32.mrf.mxu0 }
 0x287   :  { %v966_v38 = vmax.f32 %v842_v33, 0.0  ;;  %v998_v43 = vpack.c.bf16 %v968_v35, %v967_v39  ;;  %v863_v47 = vadd.f32 %v2397_v36, %v3071_v27 }
 0x288   :  { %v854_v40 = vpop.f32.mrf.mxu0 }
 0x289   :  { %v997_v42 = vpack.c.bf16 %v966_v38, %v965_v37  ;;  %v855_v45 = vadd.f32 %v3071_v27, %v854_v40  ;;  %v971_v54 = vmax.f32 %v863_v47, 0.0 }
 0x28a   :  { %v2398_v44 = vpop.f32.mrf.mxu0 }
 0x28b   :  { %v866_v46 = vadd.f32 %v2398_v44, %v3071_v27  ;;  %2439 = vmatprep.mubr.bf16.mxu1 %v997_v42  ;;  %v969_v52 = vmax.f32 %v855_v45, 0.0 }
 0x28c   :  { %v857_v48 = vpop.f32.mrf.mxu0  ;;  %2440 = vmatmul.mubr.bf16.vlgmr.msra.gmra.mxu1 %v998_v43 }
 0x28d   :  { %v858_v49 = vadd.f32 %v3071_v27, %v857_v48  ;;  %v972_v50 = vmax.f32 %v866_v46, 0.0 }
 0x28e   :  { %v2401_v51 = vpop.f32.mrf.mxu0 }
 0x28f   :  { %v970_v53 = vmax.f32 %v858_v49, 0.0  ;;  %v1000_v57 = vpack.c.bf16 %v972_v50, %v971_v54  ;;  %v879_v61 = vadd.f32 %v2401_v51, %v3071_v27 }
 0x290   :  { %v870_v55 = vpop.f32.mrf.mxu0 }
 0x291   :  { %v999_v56 = vpack.c.bf16 %v970_v53, %v969_v52  ;;  %v871_v59 = vadd.f32 %v3071_v27, %v870_v55  ;;  %v975_v4 = vmax.f32 %v879_v61, 0.0 }
 0x292   :  { %v2402_v58 = vpop.f32.mrf.mxu0 }
 0x293   :  { %v882_v60 = vadd.f32 %v2402_v58, %v3071_v27  ;;  %2443 = vmatprep.mubr.bf16.mxu1 %v999_v56  ;;  %v973_v2 = vmax.f32 %v871_v59, 0.0 }
 0x294   :  { %v873_v62 = vpop.f32.mrf.mxu0  ;;  %2444 = vmatmul.mubr.bf16.gmra.mxu1 %v1000_v57 }
 0x295   :  { %v874_v63 = vadd.f32 %v3071_v27, %v873_v62  ;;  %v976_v0 = vmax.f32 %v882_v60, 0.0 }
 0x296   :  { %v2405_v1 = vpop.f32.mrf.mxu0 }
 0x297   :  { %v974_v3 = vmax.f32 %v874_v63, 0.0  ;;  %v1002_v7 = vpack.c.bf16 %v976_v0, %v975_v4  ;;  %v895_v11 = vadd.f32 %v2405_v1, %v3071_v27 }
 0x298   :  { %v886_v5 = vpop.f32.mrf.mxu0 }
 0x299   :  { %v1001_v6 = vpack.c.bf16 %v974_v3, %v973_v2  ;;  %v887_v9 = vadd.f32 %v3071_v27, %v886_v5  ;;  %v979_v18 = vmax.f32 %v895_v11, 0.0 }
 0x29a   :  { %v2406_v8 = vpop.f32.mrf.mxu0 }
 0x29b   :  { %v898_v10 = vadd.f32 %v2406_v8, %v3071_v27  ;;  %2447 = vmatprep.mubr.bf16.mxu1 %v1001_v6  ;;  %v977_v16 = vmax.f32 %v887_v9, 0.0 }
 0x29c   :  { %v889_v12 = vpop.f32.mrf.mxu0  ;;  %2448 = vmatmul.mubr.bf16.gmra.mxu1 %v1002_v7 }
 0x29d   :  { %v890_v13 = vadd.f32 %v3071_v27, %v889_v12  ;;  %v980_v14 = vmax.f32 %v898_v10, 0.0 }
 0x29e   :  { %v2409_v15 = vpop.f32.mrf.mxu0 }
 0x29f   :  { %v978_v17 = vmax.f32 %v890_v13, 0.0  ;;  %v1004_v34 = vpack.c.bf16 %v980_v14, %v979_v18  ;;  %v911_v24 = vadd.f32 %v2409_v15, %v3071_v27  ;;  %v2622_v13 = vld [vmem:[%s3346_s9] sm:$0xff]   ;;  %v2623_v14 = vld [vmem:[%s3348_s11 + $0x38] sm:$0xff]   ;;  %v2625_v15 = vld [vmem:[%s3348_s11 + $0x28] sm:$0xff]  }
 0x2a0   :  { %v902_v19 = vpop.f32.mrf.mxu0  ;;  %2485 = vmatprep.subr.bf16.mxu0 %v2622_v13  ;;  %2519 = vmatprep.subr.bf16.mxu1 %v2623_v14  ;;  %v2628_v18 = vld [vmem:[%s3348_s11 + $0x10] sm:$0xff]  }
 0x2a1   :  { %v1003_v20 = vpack.c.bf16 %v978_v17, %v977_v16  ;;  %v903_v22 = vadd.f32 %v3071_v27, %v902_v19  ;;  %v983_v31 = vmax.f32 %v911_v24, 0.0  ;;  %2486 = vmatpush3.bf16.msra.mxu0 %v2622_v13  ;;  %2520 = vmatpush3.bf16.msra.mxu1 %v2623_v14  ;;  %v2626_v16 = vld [vmem:[%s3348_s11 + $0x20] sm:$0xff]   ;;  %v2627_v17 = vld [vmem:[%s3348_s11 + $0x18] sm:$0xff]   ;;  %v2629_v19 = vld [vmem:[%s3348_s11 + $0x8] sm:$0xff]  }
 0x2a2   :  { %v2410_v21 = vpop.f32.mrf.mxu0 }
 0x2a3   :  { %v914_v23 = vadd.f32 %v2410_v21, %v3071_v27  ;;  %2451 = vmatprep.mubr.bf16.mxu1 %v1003_v20  ;;  %v981_v29 = vmax.f32 %v903_v22, 0.0  ;;  %v3132_v21 = vld [vmem:[%s3349_s8] ss:$0 sm:$0xff] }
 0x2a4   :  { %v905_v25 = vpop.f32.mrf.mxu0  ;;  %2452 = vmatmul.mubr.bf16.gmra.mxu1 %v1004_v34 }
 0x2a5   :  { %v906_v26 = vadd.f32 %v3071_v27, %v905_v25  ;;  %v984_v41 = vmax.f32 %v914_v23, 0.0 }
 0x2a6   :  { %v2413_v28 = vpop.f32.mrf.mxu0 }
 0x2a7   :  { %v982_v30 = vmax.f32 %v906_v26, 0.0  ;;  %v1006_v35 = vpack.c.bf16 %v984_v41, %v983_v31  ;;  %v927_v39 = vadd.f32 %v2413_v28, %v3071_v27 }
 0x2a8   :  { %v918_v32 = vpop.f32.mrf.mxu0 }
 0x2a9   :  { %v1005_v33 = vpack.c.bf16 %v982_v30, %v981_v29  ;;  %v919_v37 = vadd.f32 %v3071_v27, %v918_v32  ;;  %v987_v47 = vmax.f32 %v927_v39, 0.0 }
 0x2aa   :  { %v2414_v36 = vpop.f32.mrf.mxu0 }
 0x2ab   :  { %v930_v38 = vadd.f32 %v2414_v36, %v3071_v27  ;;  %2455 = vmatprep.mubr.bf16.mxu1 %v1005_v33  ;;  %v985_v45 = vmax.f32 %v919_v37, 0.0 }
 0x2ac   :  { %v921_v40 = vpop.f32.mrf.mxu0  ;;  %2456 = vmatmul.mubr.bf16.gmra.mxu1 %v1006_v35 }
 0x2ad   :  { %v922_v42 = vadd.f32 %v3071_v27, %v921_v40  ;;  %v988_v43 = vmax.f32 %v930_v38, 0.0 }
 0x2ae   :  { %v2417_v44 = vpop.f32.mrf.mxu0 }
 0x2af   :  { %v986_v46 = vmax.f32 %v922_v42, 0.0  ;;  %v1008_v50 = vpack.c.bf16 %v988_v43, %v987_v47  ;;  %v943_v54 = vadd.f32 %v2417_v44, %v3071_v27 }
 0x2b0   :  { %v934_v48 = vpop.f32.mrf.mxu0 }
 0x2b1   :  { %v1007_v49 = vpack.c.bf16 %v986_v46, %v985_v45  ;;  %v935_v52 = vadd.f32 %v3071_v27, %v934_v48  ;;  %v991_v61 = vmax.f32 %v943_v54, 0.0 }
 0x2b2   :  { %v2418_v51 = vpop.f32.mrf.mxu0 }
 0x2b3   :  { %v946_v53 = vadd.f32 %v2418_v51, %v3071_v27  ;;  %2459 = vmatprep.mubr.bf16.mxu1 %v1007_v49  ;;  %v989_v59 = vmax.f32 %v935_v52, 0.0 }
 0x2b4   :  { %v937_v55 = vpop.f32.mrf.mxu0  ;;  %2460 = vmatmul.mubr.bf16.gmra.mxu1 %v1008_v50 }
 0x2b5   :  { %v938_v56 = vadd.f32 %v3071_v27, %v937_v55  ;;  %v992_v57 = vmax.f32 %v946_v53, 0.0 }
 0x2b6   :  { %v2421_v58 = vpop.f32.mrf.mxu0 }
 0x2b7   :  { %v990_v60 = vmax.f32 %v938_v56, 0.0  ;;  %v1010_v0 = vpack.c.bf16 %v992_v57, %v991_v61  ;;  %v959_v4 = vadd.f32 %v2421_v58, %v3071_v27 }
 0x2b8   :  { %v950_v62 = vpop.f32.mrf.mxu0 }
 0x2b9   :  { %v1009_v63 = vpack.c.bf16 %v990_v60, %v989_v59  ;;  %v951_v2 = vadd.f32 %v3071_v27, %v950_v62  ;;  %v995_v10 = vmax.f32 %v959_v4, 0.0 }
 0x2ba   :  { %v2422_v1 = vpop.f32.mrf.mxu0 }
 0x2bb   :  { %v962_v3 = vadd.f32 %v2422_v1, %v3071_v27  ;;  %2463 = vmatprep.mubr.bf16.mxu1 %v1009_v63  ;;  %v993_v8 = vmax.f32 %v951_v2, 0.0 }
 0x2bc   :  { %v953_v5 = vpop.f32.mrf.mxu0  ;;  %2464 = vmatmul.mubr.bf16.gmra.mxu1 %v1010_v0 }
 0x2bd   :  { %v954_v6 = vadd.f32 %v3071_v27, %v953_v5  ;;  %v996_v7 = vmax.f32 %v962_v3, 0.0  ;;  %v2624_v27 = vld [vmem:[%s3348_s11 + $0x30] sm:$0xff]  }
 0x2be   :  { %2521 = vmatprep.subr.bf16.mxu1 %v2624_v27 }
 0x2bf   :  { %v994_v9 = vmax.f32 %v954_v6, 0.0  ;;  %v1012_v12 = vpack.c.bf16 %v996_v7, %v995_v10  ;;  %2522 = vmatpush3.bf16.msra.mxu1 %v2624_v27 }
 0x2c0   :  { %2523 = vmatprep.subr.bf16.mxu1 %v2625_v15 }
 0x2c1   :  { %v1011_v11 = vpack.c.bf16 %v994_v9, %v993_v8 }
 0x2c3   :  { %2467 = vmatprep.mubr.bf16.mxu1 %v1011_v11  ;;  %2524 = vmatpush3.bf16.msra.mxu1 %v2625_v15 }
 0x2c4   :  { %2468 = vmatmul.mubr.bf16.gmra.mxu1 %v1012_v12  ;;  %2525 = vmatprep.subr.bf16.mxu1 %v2626_v16 }
 0x2c7   :  { %2526 = vmatpush3.bf16.msra.mxu1 %v2626_v16 }
 0x2c8   :  { %2527 = vmatprep.subr.bf16.mxu1 %v2627_v17 }
 0x2cb   :  { %2528 = vmatpush3.bf16.msra.mxu1 %v2627_v17 }
 0x2cc   :  { %2529 = vmatprep.subr.bf16.mxu1 %v2628_v18 }
 0x2cf   :  { %2530 = vmatpush3.bf16.msra.mxu1 %v2628_v18 }
 0x2d0   :  { %2531 = vmatprep.subr.bf16.mxu1 %v2629_v19 }
 0x2d3   :  { %2532 = vmatpush3.bf16.msra.mxu1 %v2629_v19 }
 0x34c   :  { %v2441_v20 = vpop.f32.mrf.mxu1 }
 0x34d   :  { %v1127_v25 = vadd.f32 %v2441_v20, %v3132_v21 }
 0x34e   :  { %v1118_v34 = vpop.f32.mrf.mxu1 }
 0x34f   :  { %v1119_v23 = vadd.f32 %v3132_v21, %v1118_v34  ;;  %v1247_v32 = vmax.f32 %v1127_v25, 0.0 }
 0x350   :  { %v2442_v22 = vpop.f32.mrf.mxu1 }
 0x351   :  { %v1130_v24 = vadd.f32 %v2442_v22, %v3132_v21  ;;  %v1245_v30 = vmax.f32 %v1119_v23, 0.0 }
 0x352   :  { %v1121_v26 = vpop.f32.mrf.mxu1 }
 0x353   :  { %v1122_v41 = vadd.f32 %v3132_v21, %v1121_v26  ;;  %v1248_v28 = vmax.f32 %v1130_v24, 0.0 }
 0x354   :  { %v2445_v29 = vpop.f32.mrf.mxu1 }
 0x355   :  { %v1246_v31 = vmax.f32 %v1122_v41, 0.0  ;;  %v1278_v36 = vpack.c.bf16 %v1248_v28, %v1247_v32  ;;  %v1143_v40 = vadd.f32 %v2445_v29, %v3132_v21 }
 0x356   :  { %v1134_v33 = vpop.f32.mrf.mxu1 }
 0x357   :  { %v1277_v35 = vpack.c.bf16 %v1246_v31, %v1245_v30  ;;  %v1135_v38 = vadd.f32 %v3132_v21, %v1134_v33  ;;  %v1251_v48 = vmax.f32 %v1143_v40, 0.0 }
 0x358   :  { %v2446_v37 = vpop.f32.mrf.mxu1 }
 0x359   :  { %v1146_v39 = vadd.f32 %v2446_v37, %v3132_v21  ;;  %2487 = vmatprep.mubr.bf16.mxu0 %v1277_v35  ;;  %v1249_v46 = vmax.f32 %v1135_v38, 0.0 }
 0x35a   :  { %v1137_v42 = vpop.f32.mrf.mxu1  ;;  %2488 = vmatmul.mubr.bf16.vlgmr.msra.gmra.mxu0 %v1278_v36 }
 0x35b   :  { %v1138_v43 = vadd.f32 %v3132_v21, %v1137_v42  ;;  %v1252_v44 = vmax.f32 %v1146_v39, 0.0 }
 0x35c   :  { %v2449_v45 = vpop.f32.mrf.mxu1 }
 0x35d   :  { %v1250_v47 = vmax.f32 %v1138_v43, 0.0  ;;  %v1280_v51 = vpack.c.bf16 %v1252_v44, %v1251_v48  ;;  %v1159_v55 = vadd.f32 %v2449_v45, %v3132_v21 }
 0x35e   :  { %v1150_v49 = vpop.f32.mrf.mxu1 }
 0x35f   :  { %v1279_v50 = vpack.c.bf16 %v1250_v47, %v1249_v46  ;;  %v1151_v53 = vadd.f32 %v3132_v21, %v1150_v49  ;;  %v1255_v62 = vmax.f32 %v1159_v55, 0.0 }
 0x360   :  { %v2450_v52 = vpop.f32.mrf.mxu1 }
 0x361   :  { %v1162_v54 = vadd.f32 %v2450_v52, %v3132_v21  ;;  %2491 = vmatprep.mubr.bf16.mxu0 %v1279_v50  ;;  %v1253_v60 = vmax.f32 %v1151_v53, 0.0 }
 0x362   :  { %v1153_v56 = vpop.f32.mrf.mxu1  ;;  %2492 = vmatmul.mubr.bf16.gmra.mxu0 %v1280_v51 }
 0x363   :  { %v1154_v57 = vadd.f32 %v3132_v21, %v1153_v56  ;;  %v1256_v58 = vmax.f32 %v1162_v54, 0.0 }
 0x364   :  { %v2453_v59 = vpop.f32.mrf.mxu1 }
 0x365   :  { %v1254_v61 = vmax.f32 %v1154_v57, 0.0  ;;  %v1282_v1 = vpack.c.bf16 %v1256_v58, %v1255_v62  ;;  %v1175_v5 = vadd.f32 %v2453_v59, %v3132_v21 }
 0x366   :  { %v1166_v63 = vpop.f32.mrf.mxu1 }
 0x367   :  { %v1281_v0 = vpack.c.bf16 %v1254_v61, %v1253_v60  ;;  %v1167_v3 = vadd.f32 %v3132_v21, %v1166_v63  ;;  %v1259_v12 = vmax.f32 %v1175_v5, 0.0 }
 0x368   :  { %v2454_v2 = vpop.f32.mrf.mxu1 }
 0x369   :  { %v1178_v4 = vadd.f32 %v2454_v2, %v3132_v21  ;;  %2495 = vmatprep.mubr.bf16.mxu0 %v1281_v0  ;;  %v1257_v10 = vmax.f32 %v1167_v3, 0.0 }
 0x36a   :  { %v1169_v6 = vpop.f32.mrf.mxu1  ;;  %2496 = vmatmul.mubr.bf16.gmra.mxu0 %v1282_v1 }
 0x36b   :  { %v1170_v7 = vadd.f32 %v3132_v21, %v1169_v6  ;;  %v1260_v8 = vmax.f32 %v1178_v4, 0.0 }
 0x36c   :  { %v2457_v9 = vpop.f32.mrf.mxu1 }
 0x36d   :  { %v1258_v11 = vmax.f32 %v1170_v7, 0.0  ;;  %v1284_v27 = vpack.c.bf16 %v1260_v8, %v1259_v12  ;;  %v1191_v18 = vadd.f32 %v2457_v9, %v3132_v21  ;;  %v2630_v7 = vld [vmem:[%s3348_s11] sm:$0xff]  }
 0x36e   :  { %v1182_v13 = vpop.f32.mrf.mxu1  ;;  %2533 = vmatprep.subr.bf16.mxu1 %v2630_v7 }
 0x36f   :  { %v1283_v14 = vpack.c.bf16 %v1258_v11, %v1257_v10  ;;  %v1183_v16 = vadd.f32 %v3132_v21, %v1182_v13  ;;  %v1263_v25 = vmax.f32 %v1191_v18, 0.0  ;;  %2534 = vmatpush3.bf16.msra.mxu1 %v2630_v7 }
 0x370   :  { %v2458_v15 = vpop.f32.mrf.mxu1 }
 0x371   :  { %v1194_v17 = vadd.f32 %v2458_v15, %v3132_v21  ;;  %2499 = vmatprep.mubr.bf16.mxu0 %v1283_v14  ;;  %v1261_v23 = vmax.f32 %v1183_v16, 0.0 }
 0x372   :  { %v1185_v19 = vpop.f32.mrf.mxu1  ;;  %2500 = vmatmul.mubr.bf16.gmra.mxu0 %v1284_v27 }
 0x373   :  { %v1186_v20 = vadd.f32 %v3132_v21, %v1185_v19  ;;  %v1264_v34 = vmax.f32 %v1194_v17, 0.0 }
 0x374   :  { %v2461_v22 = vpop.f32.mrf.mxu1 }
 0x375   :  { %v1262_v24 = vmax.f32 %v1186_v20, 0.0  ;;  %v1286_v28 = vpack.c.bf16 %v1264_v34, %v1263_v25  ;;  %v1207_v32 = vadd.f32 %v2461_v22, %v3132_v21 }
 0x376   :  { %v1198_v26 = vpop.f32.mrf.mxu1 }
 0x377   :  { %v1285_v41 = vpack.c.bf16 %v1262_v24, %v1261_v23  ;;  %v1199_v30 = vadd.f32 %v3132_v21, %v1198_v26  ;;  %v1267_v40 = vmax.f32 %v1207_v32, 0.0 }
 0x378   :  { %v2462_v29 = vpop.f32.mrf.mxu1 }
 0x379   :  { %v1210_v31 = vadd.f32 %v2462_v29, %v3132_v21  ;;  %2503 = vmatprep.mubr.bf16.mxu0 %v1285_v41  ;;  %v1265_v38 = vmax.f32 %v1199_v30, 0.0 }
 0x37a   :  { %v1201_v33 = vpop.f32.mrf.mxu1  ;;  %2504 = vmatmul.mubr.bf16.gmra.mxu0 %v1286_v28 }
 0x37b   :  { %v1202_v35 = vadd.f32 %v3132_v21, %v1201_v33  ;;  %v1268_v36 = vmax.f32 %v1210_v31, 0.0 }
 0x37c   :  { %v2465_v37 = vpop.f32.mrf.mxu1 }
 0x37d   :  { %v1266_v39 = vmax.f32 %v1202_v35, 0.0  ;;  %v1288_v44 = vpack.c.bf16 %v1268_v36, %v1267_v40  ;;  %v1223_v48 = vadd.f32 %v2465_v37, %v3132_v21 }
 0x37e   :  { %v1214_v42 = vpop.f32.mrf.mxu1 }
 0x37f   :  { %v1287_v43 = vpack.c.bf16 %v1266_v39, %v1265_v38  ;;  %v1215_v46 = vadd.f32 %v3132_v21, %v1214_v42  ;;  %v1271_v55 = vmax.f32 %v1223_v48, 0.0 }
 0x380   :  { %v2466_v45 = vpop.f32.mrf.mxu1 }
 0x381   :  { %v1226_v47 = vadd.f32 %v2466_v45, %v3132_v21  ;;  %2507 = vmatprep.mubr.bf16.mxu0 %v1287_v43  ;;  %v1269_v53 = vmax.f32 %v1215_v46, 0.0 }
 0x382   :  { %v1217_v49 = vpop.f32.mrf.mxu1  ;;  %2508 = vmatmul.mubr.bf16.gmra.mxu0 %v1288_v44 }
 0x383   :  { %v1218_v50 = vadd.f32 %v3132_v21, %v1217_v49  ;;  %v1272_v51 = vmax.f32 %v1226_v47, 0.0 }
 0x384   :  { %v2469_v52 = vpop.f32.mrf.mxu1 }
 0x385   :  { %v1270_v54 = vmax.f32 %v1218_v50, 0.0  ;;  %v1290_v58 = vpack.c.bf16 %v1272_v51, %v1271_v55  ;;  %v1239_v62 = vadd.f32 %v2469_v52, %v3132_v21 }
 0x386   :  { %v1230_v56 = vpop.f32.mrf.mxu1 }
 0x387   :  { %v1289_v57 = vpack.c.bf16 %v1270_v54, %v1269_v53  ;;  %v1231_v60 = vadd.f32 %v3132_v21, %v1230_v56  ;;  %v1275_v4 = vmax.f32 %v1239_v62, 0.0 }
 0x388   :  { %v2470_v59 = vpop.f32.mrf.mxu1 }
 0x389   :  { %v1242_v61 = vadd.f32 %v2470_v59, %v3132_v21  ;;  %2511 = vmatprep.mubr.bf16.mxu0 %v1289_v57  ;;  %v1273_v2 = vmax.f32 %v1231_v60, 0.0 }
 0x38a   :  { %v1233_v63 = vpop.f32.mrf.mxu1  ;;  %2512 = vmatmul.mubr.bf16.gmra.mxu0 %v1290_v58 }
 0x38b   :  { %v1234_v0 = vadd.f32 %v3132_v21, %v1233_v63  ;;  %v1276_v1 = vmax.f32 %v1242_v61, 0.0  ;;  %v3172_v21 = vld [vmem:[%s3350_s10] ss:$0 sm:$0xff] }
 0x38d   :  { %v1274_v3 = vmax.f32 %v1234_v0, 0.0  ;;  %v1292_v6 = vpack.c.bf16 %v1276_v1, %v1275_v4 }
 0x38f   :  { %v1291_v5 = vpack.c.bf16 %v1274_v3, %v1273_v2 }
 0x391   :  { %2515 = vmatprep.mubr.bf16.mxu0 %v1291_v5 }
 0x392   :  { %2516 = vmatmul.mubr.bf16.gmra.mxu0 %v1292_v6 }
 0x41a   :  { %v2489_v8 = vpop.f32.mrf.mxu0 }
 0x41b   :  { %v1407_v13 = vadd.f32 %v2489_v8, %v3172_v21 }
 0x41c   :  { %v1398_v9 = vpop.f32.mrf.mxu0 }
 0x41d   :  { %v1399_v11 = vadd.f32 %v3172_v21, %v1398_v9  ;;  %v1527_v19 = vmax.f32 %v1407_v13, 0.0 }
 0x41e   :  { %v2490_v10 = vpop.f32.mrf.mxu0 }
 0x41f   :  { %v1410_v12 = vadd.f32 %v2490_v10, %v3172_v21  ;;  %v1525_v17 = vmax.f32 %v1399_v11, 0.0 }
 0x420   :  { %v1401_v14 = vpop.f32.mrf.mxu0 }
 0x421   :  { %v1402_v27 = vadd.f32 %v3172_v21, %v1401_v14  ;;  %v1528_v15 = vmax.f32 %v1410_v12, 0.0 }
 0x422   :  { %v2493_v16 = vpop.f32.mrf.mxu0 }
 0x423   :  { %v1526_v18 = vmax.f32 %v1402_v27, 0.0  ;;  %v1558_v22 = vpack.c.bf16 %v1528_v15, %v1527_v19  ;;  %v1423_v26 = vadd.f32 %v2493_v16, %v3172_v21 }
 0x424   :  { %v1414_v20 = vpop.f32.mrf.mxu0 }
 0x425   :  { %v1557_v34 = vpack.c.bf16 %v1526_v18, %v1525_v17  ;;  %v1415_v24 = vadd.f32 %v3172_v21, %v1414_v20  ;;  %v1531_v33 = vmax.f32 %v1423_v26, 0.0 }
 0x426   :  { %v2494_v23 = vpop.f32.mrf.mxu0 }
 0x427   :  { %v1426_v25 = vadd.f32 %v2494_v23, %v3172_v21  ;;  %2535 = vmatprep.mubr.bf16.mxu1 %v1557_v34  ;;  %v1529_v31 = vmax.f32 %v1415_v24, 0.0 }
 0x428   :  { %v1417_v41 = vpop.f32.mrf.mxu0  ;;  %2536 = vmatmul.mubr.bf16.vlgmr.msra.gmra.mxu1 %v1558_v22 }
 0x429   :  { %v1418_v28 = vadd.f32 %v3172_v21, %v1417_v41  ;;  %v1532_v29 = vmax.f32 %v1426_v25, 0.0 }
 0x42a   :  { %v2497_v30 = vpop.f32.mrf.mxu0 }
 0x42b   :  { %v1530_v32 = vmax.f32 %v1418_v28, 0.0  ;;  %v1560_v37 = vpack.c.bf16 %v1532_v29, %v1531_v33  ;;  %v1439_v42 = vadd.f32 %v2497_v30, %v3172_v21 }
 0x42c   :  { %v1430_v35 = vpop.f32.mrf.mxu0 }
 0x42d   :  { %v1559_v36 = vpack.c.bf16 %v1530_v32, %v1529_v31  ;;  %v1431_v39 = vadd.f32 %v3172_v21, %v1430_v35  ;;  %v1535_v49 = vmax.f32 %v1439_v42, 0.0 }
 0x42e   :  { %v2498_v38 = vpop.f32.mrf.mxu0 }
 0x42f   :  { %v1442_v40 = vadd.f32 %v2498_v38, %v3172_v21  ;;  %2539 = vmatprep.mubr.bf16.mxu1 %v1559_v36  ;;  %v1533_v47 = vmax.f32 %v1431_v39, 0.0 }
 0x430   :  { %v1433_v43 = vpop.f32.mrf.mxu0  ;;  %2540 = vmatmul.mubr.bf16.gmra.mxu1 %v1560_v37 }
 0x431   :  { %v1434_v44 = vadd.f32 %v3172_v21, %v1433_v43  ;;  %v1536_v45 = vmax.f32 %v1442_v40, 0.0 }
 0x432   :  { %v2501_v46 = vpop.f32.mrf.mxu0 }
 0x433   :  { %v1534_v48 = vmax.f32 %v1434_v44, 0.0  ;;  %v1562_v52 = vpack.c.bf16 %v1536_v45, %v1535_v49  ;;  %v1455_v56 = vadd.f32 %v2501_v46, %v3172_v21 }
 0x434   :  { %v1446_v50 = vpop.f32.mrf.mxu0 }
 0x435   :  { %v1561_v51 = vpack.c.bf16 %v1534_v48, %v1533_v47  ;;  %v1447_v54 = vadd.f32 %v3172_v21, %v1446_v50  ;;  %v1539_v63 = vmax.f32 %v1455_v56, 0.0 }
 0x436   :  { %v2502_v53 = vpop.f32.mrf.mxu0 }
 0x437   :  { %v1458_v55 = vadd.f32 %v2502_v53, %v3172_v21  ;;  %2543 = vmatprep.mubr.bf16.mxu1 %v1561_v51  ;;  %v1537_v61 = vmax.f32 %v1447_v54, 0.0 }
 0x438   :  { %v1449_v57 = vpop.f32.mrf.mxu0  ;;  %2544 = vmatmul.mubr.bf16.gmra.mxu1 %v1562_v52 }
 0x439   :  { %v1450_v58 = vadd.f32 %v3172_v21, %v1449_v57  ;;  %v1540_v59 = vmax.f32 %v1458_v55, 0.0 }
 0x43a   :  { %v2505_v60 = vpop.f32.mrf.mxu0 }
 0x43b   :  { %v1538_v62 = vmax.f32 %v1450_v58, 0.0  ;;  %v1564_v2 = vpack.c.bf16 %v1540_v59, %v1539_v63  ;;  %v1471_v6 = vadd.f32 %v2505_v60, %v3172_v21  ;;  %v3209_v58 = vld [vmem:[%s3351_s12] ss:$0 sm:$0xff] }
 0x43c   :  { %v1462_v0 = vpop.f32.mrf.mxu0 }
 0x43d   :  { %v1563_v1 = vpack.c.bf16 %v1538_v62, %v1537_v61  ;;  %v1463_v4 = vadd.f32 %v3172_v21, %v1462_v0  ;;  %v1543_v13 = vmax.f32 %v1471_v6, 0.0 }
 0x43e   :  { %v2506_v3 = vpop.f32.mrf.mxu0 }
 0x43f   :  { %v1474_v5 = vadd.f32 %v2506_v3, %v3172_v21  ;;  %2547 = vmatprep.mubr.bf16.mxu1 %v1563_v1  ;;  %v1541_v11 = vmax.f32 %v1463_v4, 0.0 }
 0x440   :  { %v1465_v7 = vpop.f32.mrf.mxu0  ;;  %2548 = vmatmul.mubr.bf16.gmra.mxu1 %v1564_v2 }
 0x441   :  { %v1466_v8 = vadd.f32 %v3172_v21, %v1465_v7  ;;  %v1544_v9 = vmax.f32 %v1474_v5, 0.0 }
 0x442   :  { %v2509_v10 = vpop.f32.mrf.mxu0 }
 0x443   :  { %v1542_v12 = vmax.f32 %v1466_v8, 0.0  ;;  %v1566_v15 = vpack.c.bf16 %v1544_v9, %v1543_v13  ;;  %v1487_v19 = vadd.f32 %v2509_v10, %v3172_v21 }
 0x444   :  { %v1478_v14 = vpop.f32.mrf.mxu0 }
 0x445   :  { %v1565_v27 = vpack.c.bf16 %v1542_v12, %v1541_v11  ;;  %v1479_v17 = vadd.f32 %v3172_v21, %v1478_v14  ;;  %v1547_v26 = vmax.f32 %v1487_v19, 0.0 }
 0x446   :  { %v2510_v16 = vpop.f32.mrf.mxu0 }
 0x447   :  { %v1490_v18 = vadd.f32 %v2510_v16, %v3172_v21  ;;  %2551 = vmatprep.mubr.bf16.mxu1 %v1565_v27  ;;  %v1545_v24 = vmax.f32 %v1479_v17, 0.0 }
 0x448   :  { %v1481_v20 = vpop.f32.mrf.mxu0  ;;  %2552 = vmatmul.mubr.bf16.gmra.mxu1 %v1566_v15 }
 0x449   :  { %v1482_v34 = vadd.f32 %v3172_v21, %v1481_v20  ;;  %v1548_v22 = vmax.f32 %v1490_v18, 0.0 }
 0x44a   :  { %v2513_v23 = vpop.f32.mrf.mxu0 }
 0x44b   :  { %v1546_v25 = vmax.f32 %v1482_v34, 0.0  ;;  %v1568_v29 = vpack.c.bf16 %v1548_v22, %v1547_v26  ;;  %v1503_v33 = vadd.f32 %v2513_v23, %v3172_v21 }
 0x44c   :  { %v1494_v41 = vpop.f32.mrf.mxu0 }
 0x44d   :  { %v1567_v28 = vpack.c.bf16 %v1546_v25, %v1545_v24  ;;  %v1495_v31 = vadd.f32 %v3172_v21, %v1494_v41  ;;  %v1551_v42 = vmax.f32 %v1503_v33, 0.0 }
 0x44e   :  { %v2514_v30 = vpop.f32.mrf.mxu0 }
 0x44f   :  { %v1506_v32 = vadd.f32 %v2514_v30, %v3172_v21  ;;  %2555 = vmatprep.mubr.bf16.mxu1 %v1567_v28  ;;  %v1549_v39 = vmax.f32 %v1495_v31, 0.0 }
 0x450   :  { %v1497_v35 = vpop.f32.mrf.mxu0  ;;  %2556 = vmatmul.mubr.bf16.gmra.mxu1 %v1568_v29 }
 0x451   :  { %v1498_v36 = vadd.f32 %v3172_v21, %v1497_v35  ;;  %v1552_v37 = vmax.f32 %v1506_v32, 0.0 }
 0x452   :  { %v2517_v38 = vpop.f32.mrf.mxu0 }
 0x453   :  { %v1550_v40 = vmax.f32 %v1498_v36, 0.0  ;;  %v1570_v45 = vpack.c.bf16 %v1552_v37, %v1551_v42  ;;  %v1519_v49 = vadd.f32 %v2517_v38, %v3172_v21 }
 0x454   :  { %v1510_v43 = vpop.f32.mrf.mxu0 }
 0x455   :  { %v1569_v44 = vpack.c.bf16 %v1550_v40, %v1549_v39  ;;  %v1511_v47 = vadd.f32 %v3172_v21, %v1510_v43  ;;  %v1555_v55 = vmax.f32 %v1519_v49, 0.0 }
 0x456   :  { %v2518_v46 = vpop.f32.mrf.mxu0 }
 0x457   :  { %v1522_v48 = vadd.f32 %v2518_v46, %v3172_v21  ;;  %2559 = vmatprep.mubr.bf16.mxu1 %v1569_v44  ;;  %v1553_v53 = vmax.f32 %v1511_v47, 0.0 }
 0x458   :  { %v1513_v50 = vpop.f32.mrf.mxu0  ;;  %2560 = vmatmul.mubr.bf16.gmra.mxu1 %v1570_v45 }
 0x459   :  { %v1514_v51 = vadd.f32 %v3172_v21, %v1513_v50  ;;  %v1556_v52 = vmax.f32 %v1522_v48, 0.0 }
 0x45b   :  { %v1554_v54 = vmax.f32 %v1514_v51, 0.0  ;;  %v1572_v57 = vpack.c.bf16 %v1556_v52, %v1555_v55 }
 0x45d   :  { %v1571_v56 = vpack.c.bf16 %v1554_v54, %v1553_v53 }
 0x45f   :  { %2563 = vmatprep.mubr.bf16.mxu1 %v1571_v56 }
 0x460   :  { %2564 = vmatmul.mubr.bf16.gmra.mxu1 %v1572_v57 }
 0x4e8   :  { %v2537_v59 = vpop.f32.mrf.mxu1 }
 0x4e9   :  { %v1687_v60 = vadd.f32 %v2537_v59, %v3209_v58 }
 0x4ea   :  { %v1678_v61 = vpop.f32.mrf.mxu1 }
 0x4eb   :  { %v2105_v62 = vmul.f32 -1.442695, %v1687_v60  ;;  %v1679_v21 = vadd.f32 %v3209_v58, %v1678_v61 }
 0x4ec   :  { %v2538_v63 = vpop.f32.mrf.mxu1 }
 0x4ed   :  { %2631 = vpow2.f32 %v2105_v62  ;;  %v2103_v0 = vmul.f32 -1.442695, %v1679_v21  ;;  %v1690_v1 = vadd.f32 %v2538_v63, %v3209_v58 }
 0x4ee   :  { %v1681_v2 = vpop.f32.mrf.mxu1 }
 0x4ef   :  { %2633 = vpow2.f32 %v2103_v0  ;;  %v2106_v3 = vmul.f32 -1.442695, %v1690_v1  ;;  %v1682_v4 = vadd.f32 %v3209_v58, %v1681_v2 }
 0x4f0   :  { %v2541_v5 = vpop.f32.mrf.mxu1 }
 0x4f1   :  { %2635 = vpow2.f32 %v2106_v3  ;;  %v2104_v6 = vmul.f32 -1.442695, %v1682_v4  ;;  %v1703_v7 = vadd.f32 %v2541_v5, %v3209_v58 }
 0x4f2   :  { %v1694_v8 = vpop.f32.mrf.mxu1 }
 0x4f3   :  { %2637 = vpow2.f32 %v2104_v6  ;;  %v2109_v9 = vmul.f32 -1.442695, %v1703_v7  ;;  %v1695_v10 = vadd.f32 %v3209_v58, %v1694_v8 }
 0x4f4   :  { %v2542_v11 = vpop.f32.mrf.mxu1 }
 0x4f5   :  { %2639 = vpow2.f32 %v2109_v9  ;;  %v2107_v12 = vmul.f32 -1.442695, %v1695_v10  ;;  %v1706_v13 = vadd.f32 %v2542_v11, %v3209_v58 }
 0x4f6   :  { %v1697_v14 = vpop.f32.mrf.mxu1 }
 0x4f7   :  { %2641 = vpow2.f32 %v2107_v12  ;;  %v2110_v27 = vmul.f32 -1.442695, %v1706_v13  ;;  %v1698_v15 = vadd.f32 %v3209_v58, %v1697_v14 }
 0x4f8   :  { %v2545_v16 = vpop.f32.mrf.mxu1 }
 0x4f9   :  { %2643 = vpow2.f32 %v2110_v27  ;;  %v2108_v17 = vmul.f32 -1.442695, %v1698_v15  ;;  %v1719_v18 = vadd.f32 %v2545_v16, %v3209_v58 }
 0x4fa   :  { %v2632_v19 = vpop.eup %2631  ;;  %v1710_v20 = vpop.f32.mrf.mxu1 }
 0x4fb   :  { %v1903_v34 = vadd.f32 1.0, %v2632_v19  ;;  %2645 = vpow2.f32 %v2108_v17  ;;  %v2113_v22 = vmul.f32 -1.442695, %v1719_v18  ;;  %v1711_v23 = vadd.f32 %v3209_v58, %v1710_v20 }
 0x4fc   :  { %v2634_v24 = vpop.eup %2633  ;;  %v2546_v25 = vpop.f32.mrf.mxu1 }
 0x4fd   :  { %2647 = vrcp.f32 %v1903_v34  ;;  %v1901_v26 = vadd.f32 1.0, %v2634_v24  ;;  %v2111_v41 = vmul.f32 -1.442695, %v1711_v23  ;;  %v1722_v28 = vadd.f32 %v2546_v25, %v3209_v58 }
 0x4fe   :  { %v2636_v29 = vpop.eup %2635  ;;  %2649 = vpow2.f32 %v2113_v22  ;;  %v1713_v30 = vpop.f32.mrf.mxu1 }
 0x4ff   :  { %2651 = vrcp.f32 %v1901_v26  ;;  %v1904_v31 = vadd.f32 1.0, %v2636_v29  ;;  %v2114_v32 = vmul.f32 -1.442695, %v1722_v28  ;;  %v1714_v33 = vadd.f32 %v3209_v58, %v1713_v30 }
 0x500   :  { %v2638_v35 = vpop.eup %2637  ;;  %2653 = vpow2.f32 %v2111_v41  ;;  %v2549_v36 = vpop.f32.mrf.mxu1 }
 0x501   :  { %2655 = vrcp.f32 %v1904_v31  ;;  %v1902_v37 = vadd.f32 1.0, %v2638_v35  ;;  %v2112_v38 = vmul.f32 -1.442695, %v1714_v33  ;;  %v1735_v39 = vadd.f32 %v2549_v36, %v3209_v58 }
 0x502   :  { %v2640_v40 = vpop.eup %2639  ;;  %2657 = vpow2.f32 %v2114_v32  ;;  %v1726_v42 = vpop.f32.mrf.mxu1 }
 0x503   :  { %2659 = vrcp.f32 %v1902_v37  ;;  %v1907_v43 = vadd.f32 1.0, %v2640_v40  ;;  %v2117_v44 = vmul.f32 -1.442695, %v1735_v39  ;;  %v1727_v45 = vadd.f32 %v3209_v58, %v1726_v42 }
 0x504   :  { %v2642_v46 = vpop.eup %2641  ;;  %2661 = vpow2.f32 %v2112_v38  ;;  %v2550_v47 = vpop.f32.mrf.mxu1 }
 0x505   :  { %2663 = vrcp.f32 %v1907_v43  ;;  %v1905_v48 = vadd.f32 1.0, %v2642_v46  ;;  %v2115_v49 = vmul.f32 -1.442695, %v1727_v45  ;;  %v1738_v50 = vadd.f32 %v2550_v47, %v3209_v58 }
 0x506   :  { %v2644_v51 = vpop.eup %2643  ;;  %2665 = vpow2.f32 %v2117_v44  ;;  %v1729_v52 = vpop.f32.mrf.mxu1 }
 0x507   :  { %2667 = vrcp.f32 %v1905_v48  ;;  %v1908_v53 = vadd.f32 1.0, %v2644_v51  ;;  %v2118_v54 = vmul.f32 -1.442695, %v1738_v50  ;;  %v1730_v55 = vadd.f32 %v3209_v58, %v1729_v52 }
 0x508   :  { %v2646_v56 = vpop.eup %2645  ;;  %2669 = vpow2.f32 %v2115_v49  ;;  %v2553_v57 = vpop.f32.mrf.mxu1 }
 0x509   :  { %2671 = vrcp.f32 %v1908_v53  ;;  %v1906_v59 = vadd.f32 1.0, %v2646_v56  ;;  %v2116_v60 = vmul.f32 -1.442695, %v1730_v55  ;;  %v1751_v61 = vadd.f32 %v2553_v57, %v3209_v58 }
 0x50a   :  { %v2648_v62 = vpop.eup %2647  ;;  %2673 = vpow2.f32 %v2118_v54  ;;  %v1742_v21 = vpop.f32.mrf.mxu1 }
 0x50b   :  { %v2650_v63 = vpop.eup %2649  ;;  %1999 = vst [vmem:[%s3352_s13 + $0x10] sm:$0xff] %v2648_v62  ;;  %2675 = vrcp.f32 %v1906_v59  ;;  %v2121_v0 = vmul.f32 -1.442695, %v1751_v61  ;;  %v1743_v1 = vadd.f32 %v3209_v58, %v1742_v21 }
 0x50c   :  { %v2652_v2 = vpop.eup %2651  ;;  %v1911_v3 = vadd.f32 1.0, %v2650_v63  ;;  %2677 = vpow2.f32 %v2116_v60  ;;  %v2554_v4 = vpop.f32.mrf.mxu1 }
 0x50d   :  { %v2654_v5 = vpop.eup %2653  ;;  %1997 = vst [vmem:[%s3352_s13] sm:$0xff] %v2652_v2  ;;  %2679 = vpow2.f32 %v2121_v0  ;;  %v2119_v6 = vmul.f32 -1.442695, %v1743_v1  ;;  %v1754_v7 = vadd.f32 %v2554_v4, %v3209_v58 }
 0x50e   :  { %v2656_v8 = vpop.eup %2655  ;;  %2681 = vrcp.f32 %v1911_v3  ;;  %v1909_v9 = vadd.f32 1.0, %v2654_v5  ;;  %v1745_v10 = vpop.f32.mrf.mxu1 }
 0x50f   :  { %v2658_v11 = vpop.eup %2657  ;;  %2000 = vst [vmem:[%s3352_s13 + $0x18] sm:$0xff] %v2656_v8  ;;  %2683 = vpow2.f32 %v2119_v6  ;;  %v2122_v12 = vmul.f32 -1.442695, %v1754_v7  ;;  %v1746_v13 = vadd.f32 %v3209_v58, %v1745_v10 }
 0x510   :  { %v2660_v14 = vpop.eup %2659  ;;  %2685 = vrcp.f32 %v1909_v9  ;;  %v1912_v27 = vadd.f32 1.0, %v2658_v11  ;;  %v2557_v15 = vpop.f32.mrf.mxu1 }
 0x511   :  { %v2662_v16 = vpop.eup %2661  ;;  %1998 = vst [vmem:[%s3352_s13 + $0x8] sm:$0xff] %v2660_v14  ;;  %2687 = vpow2.f32 %v2122_v12  ;;  %v2120_v17 = vmul.f32 -1.442695, %v1746_v13  ;;  %v1767_v18 = vadd.f32 %v2557_v15, %v3209_v58 }
 0x512   :  { %v2664_v19 = vpop.eup %2663  ;;  %2689 = vrcp.f32 %v1912_v27  ;;  %v1910_v20 = vadd.f32 1.0, %v2662_v16  ;;  %v1758_v34 = vpop.f32.mrf.mxu1 }
 0x513   :  { %v2666_v22 = vpop.eup %2665  ;;  %2003 = vst [vmem:[%s3352_s13 + $0x30] sm:$0xff] %v2664_v19  ;;  %2691 = vpow2.f32 %v2120_v17  ;;  %v2125_v23 = vmul.f32 -1.442695, %v1767_v18  ;;  %v1759_v24 = vadd.f32 %v3209_v58, %v1758_v34 }
 0x514   :  { %v2668_v25 = vpop.eup %2667  ;;  %2693 = vrcp.f32 %v1910_v20  ;;  %v1915_v26 = vadd.f32 1.0, %v2666_v22  ;;  %v2558_v41 = vpop.f32.mrf.mxu1 }
 0x515   :  { %v2670_v28 = vpop.eup %2669  ;;  %2001 = vst [vmem:[%s3352_s13 + $0x20] sm:$0xff] %v2668_v25  ;;  %2695 = vpow2.f32 %v2125_v23  ;;  %v2123_v29 = vmul.f32 -1.442695, %v1759_v24  ;;  %v1770_v30 = vadd.f32 %v2558_v41, %v3209_v58 }
 0x516   :  { %v2672_v31 = vpop.eup %2671  ;;  %2697 = vrcp.f32 %v1915_v26  ;;  %v1913_v32 = vadd.f32 1.0, %v2670_v28  ;;  %v1761_v33 = vpop.f32.mrf.mxu1 }
 0x517   :  { %v2674_v35 = vpop.eup %2673  ;;  %2004 = vst [vmem:[%s3352_s13 + $0x38] sm:$0xff] %v2672_v31  ;;  %2699 = vpow2.f32 %v2123_v29  ;;  %v2126_v36 = vmul.f32 -1.442695, %v1770_v30  ;;  %v1762_v37 = vadd.f32 %v3209_v58, %v1761_v33 }
 0x518   :  { %v2676_v38 = vpop.eup %2675  ;;  %2701 = vrcp.f32 %v1913_v32  ;;  %v1916_v39 = vadd.f32 1.0, %v2674_v35  ;;  %v2561_v40 = vpop.f32.mrf.mxu1 }
 0x519   :  { %v2678_v42 = vpop.eup %2677  ;;  %2002 = vst [vmem:[%s3352_s13 + $0x28] sm:$0xff] %v2676_v38  ;;  %2703 = vpow2.f32 %v2126_v36  ;;  %v2124_v43 = vmul.f32 -1.442695, %v1762_v37  ;;  %v1783_v44 = vadd.f32 %v2561_v40, %v3209_v58 }
 0x51a   :  { %v2680_v45 = vpop.eup %2679  ;;  %2705 = vrcp.f32 %v1916_v39  ;;  %v1914_v46 = vadd.f32 1.0, %v2678_v42  ;;  %v1774_v47 = vpop.f32.mrf.mxu1 }
 0x51b   :  { %v2682_v48 = vpop.eup %2681  ;;  %v1919_v49 = vadd.f32 1.0, %v2680_v45  ;;  %2707 = vpow2.f32 %v2124_v43  ;;  %v2129_v50 = vmul.f32 -1.442695, %v1783_v44  ;;  %v1775_v51 = vadd.f32 %v3209_v58, %v1774_v47 }
 0x51c   :  { %v2684_v52 = vpop.eup %2683  ;;  %2007 = vst [vmem:[%s3352_s13 + $0x50] sm:$0xff] %v2682_v48  ;;  %2709 = vrcp.f32 %v1914_v46  ;;  %v2562_v53 = vpop.f32.mrf.mxu1 }
 0x51d   :  { %v2686_v54 = vpop.eup %2685  ;;  %2711 = vrcp.f32 %v1919_v49  ;;  %v1917_v55 = vadd.f32 1.0, %v2684_v52  ;;  %v2127_v56 = vmul.f32 -1.442695, %v1775_v51  ;;  %v1786_v57 = vadd.f32 %v2562_v53, %v3209_v58 }
 0x51e   :  { %v2688_v59 = vpop.eup %2687  ;;  %2005 = vst [vmem:[%s3352_s13 + $0x40] sm:$0xff] %v2686_v54  ;;  %2713 = vpow2.f32 %v2129_v50  ;;  %v1777_v60 = vpop.f32.mrf.mxu1 }
 0x51f   :  { %v2690_v61 = vpop.eup %2689  ;;  %2715 = vrcp.f32 %v1917_v55  ;;  %v1920_v62 = vadd.f32 1.0, %v2688_v59  ;;  %v2130_v21 = vmul.f32 -1.442695, %v1786_v57  ;;  %v1778_v63 = vadd.f32 %v3209_v58, %v1777_v60 }
 0x520   :  { %v2692_v0 = vpop.eup %2691  ;;  %2008 = vst [vmem:[%s3352_s13 + $0x58] sm:$0xff] %v2690_v61  ;;  %2717 = vpow2.f32 %v2127_v56  ;;  %v2565_v1 = vpop.f32.mrf.mxu1 }
 0x521   :  { %v2694_v2 = vpop.eup %2693  ;;  %2719 = vrcp.f32 %v1920_v62  ;;  %v1918_v3 = vadd.f32 1.0, %v2692_v0  ;;  %v2128_v4 = vmul.f32 -1.442695, %v1778_v63  ;;  %v1799_v5 = vadd.f32 %v2565_v1, %v3209_v58 }
 0x522   :  { %v2696_v6 = vpop.eup %2695  ;;  %2006 = vst [vmem:[%s3352_s13 + $0x48] sm:$0xff] %v2694_v2  ;;  %2721 = vpow2.f32 %v2130_v21  ;;  %v1790_v7 = vpop.f32.mrf.mxu1 }
 0x523   :  { %v2698_v8 = vpop.eup %2697  ;;  %2723 = vrcp.f32 %v1918_v3  ;;  %v1923_v9 = vadd.f32 1.0, %v2696_v6  ;;  %v2133_v10 = vmul.f32 -1.442695, %v1799_v5  ;;  %v1791_v11 = vadd.f32 %v3209_v58, %v1790_v7 }
 0x524   :  { %v2700_v12 = vpop.eup %2699  ;;  %2011 = vst [vmem:[%s3352_s13 + $0x70] sm:$0xff] %v2698_v8  ;;  %2725 = vpow2.f32 %v2128_v4  ;;  %v2566_v13 = vpop.f32.mrf.mxu1 }
 0x525   :  { %v2702_v14 = vpop.eup %2701  ;;  %2727 = vrcp.f32 %v1923_v9  ;;  %v1921_v27 = vadd.f32 1.0, %v2700_v12  ;;  %v2131_v15 = vmul.f32 -1.442695, %v1791_v11  ;;  %v1802_v16 = vadd.f32 %v2566_v13, %v3209_v58 }
 0x526   :  { %v2704_v17 = vpop.eup %2703  ;;  %2009 = vst [vmem:[%s3352_s13 + $0x60] sm:$0xff] %v2702_v14  ;;  %2729 = vpow2.f32 %v2133_v10  ;;  %v1793_v18 = vpop.f32.mrf.mxu1 }
 0x527   :  { %v2706_v19 = vpop.eup %2705  ;;  %2731 = vrcp.f32 %v1921_v27  ;;  %v1924_v20 = vadd.f32 1.0, %v2704_v17  ;;  %v2134_v34 = vmul.f32 -1.442695, %v1802_v16  ;;  %v1794_v22 = vadd.f32 %v3209_v58, %v1793_v18 }
 0x528   :  { %v2708_v23 = vpop.eup %2707  ;;  %2012 = vst [vmem:[%s3352_s13 + $0x78] sm:$0xff] %v2706_v19  ;;  %2733 = vpow2.f32 %v2131_v15 }
 0x529   :  { %v2710_v24 = vpop.eup %2709  ;;  %2735 = vrcp.f32 %v1924_v20  ;;  %v1922_v25 = vadd.f32 1.0, %v2708_v23  ;;  %v2132_v26 = vmul.f32 -1.442695, %v1794_v22 }
 0x52a   :  { %v2712_v41 = vpop.eup %2711  ;;  %2010 = vst [vmem:[%s3352_s13 + $0x68] sm:$0xff] %v2710_v24  ;;  %2737 = vpow2.f32 %v2134_v34 }
 0x52b   :  { %v2714_v28 = vpop.eup %2713  ;;  %2015 = vst [vmem:[%s3352_s13 + $0x90] sm:$0xff] %v2712_v41  ;;  %2739 = vrcp.f32 %v1922_v25 }
 0x52c   :  { %v2716_v58 = vpop.eup %2715  ;;  %v1927_v29 = vadd.f32 1.0, %v2714_v28  ;;  %2741 = vpow2.f32 %v2132_v26 }
 0x52d   :  { %v2718_v30 = vpop.eup %2717  ;;  %2013 = vst [vmem:[%s3352_s13 + $0x80] sm:$0xff] %v2716_v58 }
 0x52e   :  { %v2720_v31 = vpop.eup %2719  ;;  %2743 = vrcp.f32 %v1927_v29  ;;  %v1925_v32 = vadd.f32 1.0, %v2718_v30 }
 0x52f   :  { %v2722_v33 = vpop.eup %2721  ;;  %2016 = vst [vmem:[%s3352_s13 + $0x98] sm:$0xff] %v2720_v31 }
 0x530   :  { %v2724_v35 = vpop.eup %2723  ;;  %2745 = vrcp.f32 %v1925_v32  ;;  %v1928_v36 = vadd.f32 1.0, %v2722_v33 }
 0x531   :  { %v2726_v37 = vpop.eup %2725  ;;  %2014 = vst [vmem:[%s3352_s13 + $0x88] sm:$0xff] %v2724_v35 }
 0x532   :  { %v2728_v38 = vpop.eup %2727  ;;  %2747 = vrcp.f32 %v1928_v36  ;;  %v1926_v39 = vadd.f32 1.0, %v2726_v37 }
 0x533   :  { %v2730_v40 = vpop.eup %2729  ;;  %2019 = vst [vmem:[%s3352_s13 + $0xb0] sm:$0xff] %v2728_v38 }
 0x534   :  { %v2732_v42 = vpop.eup %2731  ;;  %2749 = vrcp.f32 %v1926_v39  ;;  %v1931_v43 = vadd.f32 1.0, %v2730_v40 }
 0x535   :  { %v2734_v44 = vpop.eup %2733  ;;  %2017 = vst [vmem:[%s3352_s13 + $0xa0] sm:$0xff] %v2732_v42 }
 0x536   :  { %v2736_v45 = vpop.eup %2735  ;;  %2751 = vrcp.f32 %v1931_v43  ;;  %v1929_v46 = vadd.f32 1.0, %v2734_v44 }
 0x537   :  { %v2738_v47 = vpop.eup %2737  ;;  %2020 = vst [vmem:[%s3352_s13 + $0xb8] sm:$0xff] %v2736_v45 }
 0x538   :  { %v2740_v48 = vpop.eup %2739  ;;  %2753 = vrcp.f32 %v1929_v46  ;;  %v1932_v49 = vadd.f32 1.0, %v2738_v47 }
 0x539   :  { %v2742_v50 = vpop.eup %2741  ;;  %2018 = vst [vmem:[%s3352_s13 + $0xa8] sm:$0xff] %v2740_v48 }
 0x53a   :  { %2755 = vrcp.f32 %v1932_v49  ;;  %v1930_v51 = vadd.f32 1.0, %v2742_v50 }
 0x53b   :  { %v2744_v52 = vpop.eup %2743 }
 0x53c   :  { %2023 = vst [vmem:[%s3352_s13 + $0xd0] sm:$0xff] %v2744_v52  ;;  %2757 = vrcp.f32 %v1930_v51 }
 0x53d   :  { %v2746_v53 = vpop.eup %2745 }
 0x53e   :  { %2021 = vst [vmem:[%s3352_s13 + $0xc0] sm:$0xff] %v2746_v53 }
 0x53f   :  { %v2748_v54 = vpop.eup %2747 }
 0x540   :  { %2024 = vst [vmem:[%s3352_s13 + $0xd8] sm:$0xff] %v2748_v54 }
 0x541   :  { %v2750_v55 = vpop.eup %2749 }
 0x542   :  { %2022 = vst [vmem:[%s3352_s13 + $0xc8] sm:$0xff] %v2750_v55 }
 0x543   :  { %v2752_v56 = vpop.eup %2751 }
 0x544   :  { %2027 = vst [vmem:[%s3352_s13 + $0xf0] sm:$0xff] %v2752_v56 }
 0x545   :  { %v2754_v57 = vpop.eup %2753 }
 0x546   :  { %2025 = vst [vmem:[%s3352_s13 + $0xe0] sm:$0xff] %v2754_v57 }
 0x547   :  { %v2756_v59 = vpop.eup %2755 }
 0x548   :  { %2028 = vst [vmem:[%s3352_s13 + $0xf8] sm:$0xff] %v2756_v59 }
 0x549   :  { %v2758_v60 = vpop.eup %2757 }
 0x54a   :  { %2026 = vst [vmem:[%s3352_s13 + $0xe8] sm:$0xff] %v2758_v60 }

</bundles_post_ra>
